<compile_context>
chip_gen: v5e
topology: v5e:2x2
jax: 0.10.0
libtpu: 0.0.40
codegen_flags: <defaults>
</compile_context>

<pallas_src>
import functools

import jax
import jax.numpy as jnp
from jax.experimental import pallas as pl
from jax.experimental.pallas import tpu as pltpu


def _round_up(x, m):
    return ((x + m - 1) // m) * m


def _lstm_chunk_kernel(xp_ref, whh_ref, out_ref, h_ref, c_ref, *,
                       seq_len, chunk, hidden, pad_tail):
    """One (batch-block, time-chunk) grid step of the LSTM recurrence.

    xp_ref : (Tc, BT, 4H) bf16  precomputed x_t @ W_ih^T + (b_ih+b_hh), gate order i,f,g,o
    whh_ref: (H, 4H)      bf16  fused recurrent weights W_hh^T (constant block index)
    out_ref: (BT, Tc, H)  f32   hidden states, written batch-first (no wrapper transpose)
    h_ref  : (BT, H)      f32   resident across the time axis (doubles as h_n)
    c_ref  : (BT, H)      f32   resident across the time axis (doubles as c_n)
    """
    s = pl.program_id(1)
    H = hidden

    @pl.when(s == 0)
    def _init():
        h_ref[...] = jnp.zeros_like(h_ref)
        c_ref[...] = jnp.zeros_like(c_ref)

    h = h_ref[...]
    c = c_ref[...]
    w = whh_ref[...]  # hoisted: read the (H, 4H) weights once per chunk

    # Fully-unrolled chunk loop (equivalent to lax.fori_loop(..., unroll=True) but
    # with static indices, so xp reads / out stores use static sublane addressing
    # and tail masking is only emitted for the steps that can actually be padding).
    for k in range(chunk):
        # One fused, lane-dense (BT,H)@(H,4H) MXU matmul per step (bf16 in, f32 acc).
        # NOTE: h is carried in f32; only the matmul operand is cast to bf16, so
        # rounding does not feed back through the elementwise state update.
        gates = xp_ref[k].astype(jnp.float32) + jnp.dot(
            h.astype(jnp.bfloat16), w, preferred_element_type=jnp.float32)  # (BT, 4H)

        # sigmoid(x) = 0.5*tanh(0.5*x)+0.5 : one EUP transcendental instead of two.
        i_g = 0.5 * jnp.tanh(0.5 * gates[:, 0 * H:1 * H]) + 0.5
        f_g = 0.5 * jnp.tanh(0.5 * gates[:, 1 * H:2 * H]) + 0.5
        g_g = jnp.tanh(gates[:, 2 * H:3 * H])
        o_g = 0.5 * jnp.tanh(0.5 * gates[:, 3 * H:4 * H]) + 0.5

        c_new = f_g * c + i_g * g_g
        h_new = o_g * jnp.tanh(c_new)

        # Only the tail steps of the final chunk can fall beyond seq_len; the mask
        # is emitted only for those static k (zero cost when S % Tc == 0).
        if k >= chunk - pad_tail:
            valid = (s * chunk + k) < seq_len
            h_new = jnp.where(valid, h_new, h)
            c_new = jnp.where(valid, c_new, c)

        out_ref[:, k, :] = h_new
        h, c = h_new, c_new

    h_ref[...] = h
    c_ref[...] = c


def encoder_forward(x_ids, emb_table, w_ih, w_hh, b_ih, b_hh,
                    *, tc_max=32, bt_max=128):
    """x_ids: (B, S) int32 token ids.

    Returns (outputs (B, S, H), (h_n (1, B, H), c_n (1, B, H))), matching
    torch.nn.LSTM(batch_first=True, num_layers=1) on a zero initial state,
    preceded by nn.Embedding.
    """
    B, S = x_ids.shape
    V, H = emb_table.shape

    # ---- hoisted non-recurrent work: one big MXU matmul over the vocab ----------
    bias = (b_ih + b_hh).astype(jnp.float32)                                 # (4H,)
    proj_table = jnp.dot(emb_table.astype(jnp.bfloat16),
                         w_ih.T.astype(jnp.bfloat16),
                         preferred_element_type=jnp.float32) + bias          # (V, 4H) f32
    proj_table = proj_table.astype(jnp.bfloat16)  # bf16 streaming halves per-step HBM reads

    # Gather straight into the kernel's time-major layout -> no big-tensor transpose.
    x_proj = jnp.take(proj_table, x_ids.T, axis=0)                           # (S, B, 4H) bf16

    # Fused recurrent weights: (H, 4H) = W_hh^T, gate order i,f,g,o.
    whh = w_hh.T.astype(jnp.bfloat16)

    # ---- tile-size selection -----------------------------------------------------
    # Batch tile: as large as possible but >= 2 blocks when B allows (keeps v7x's
    # second TensorCore busy via the "parallel" axis); multiples of 16 keep the bf16
    # x_proj block's second-minor dim tiling-legal.
    B8 = _round_up(B, 8)
    if B8 <= 8:
        BT = B8                                    # full-extent batch block
    else:
        BT = min(bt_max, _round_up((B8 + 1) // 2, 16))
    B_pad = _round_up(B8, BT)

    # Time chunk: amortize per-grid-step overhead over Tc steps, shrunk if the
    # streamed chunk would blow a v7x-safe VMEM budget.
    def est_vmem(tc):
        w_bytes = 2 * H * 4 * H * 2          # W_hh bf16 (pipeline keeps 2 copies)
        xp_bytes = 2 * tc * BT * 4 * H * 2   # streamed bf16 input chunk, double-buffered
        out_bytes = 2 * BT * tc * H * 4      # f32 output chunk, double-buffered
        state = 2 * BT * H * 4               # resident h / c
        return w_bytes + xp_bytes + out_bytes + state

    tc = tc_max
    while tc > 8 and est_vmem(tc) > 40 * 2 ** 20:
        tc //= 2
    if S <= tc:
        Tc, S_pad = S, S                     # single chunk == full time extent
    else:
        Tc = tc                              # multiple of 8 -> legal output block dim
        S_pad = _round_up(S, Tc)
    # TODO(synk): for very large H (>= ~2048) the fused W_hh alone exceeds the VMEM
    # budget; the recurrent matmul would need to be tiled over H-chunks.

    if (S_pad, B_pad) != (S, B):
        x_proj = jnp.pad(x_proj, ((0, S_pad - S), (0, B_pad - B), (0, 0)))

    grid = (B_pad // BT, S_pad // Tc)        # (parallel batch blocks, serial time chunks)

    kernel = functools.partial(_lstm_chunk_kernel, seq_len=S, chunk=Tc,
                               hidden=H, pad_tail=S_pad - S)

    vmem_limit = int(min(64 * 2 ** 20, max(32 * 2 ** 20, 2 * est_vmem(Tc))))

    outputs, h_n, c_n = pl.pallas_call(
        kernel,
        grid=grid,
        in_specs=[
            # Per-chunk input projection, streamed (double-buffered) over the time axis.
            pl.BlockSpec((Tc, BT, 4 * H), lambda b, s: (s, b, 0)),
            # Recurrent weights: constant block index -> fetched once, stays in VMEM.
            pl.BlockSpec((H, 4 * H), lambda b, s: (0, 0)),
        ],
        out_specs=(
            # Hidden states written batch-first: no post-kernel transpose needed.
            pl.BlockSpec((BT, Tc, H), lambda b, s: (b, s, 0)),
            # h_n / c_n: constant index over the time axis -> resident accumulators.
            pl.BlockSpec((BT, H), lambda b, s: (b, 0)),
            pl.BlockSpec((BT, H), lambda b, s: (b, 0)),
        ),
        out_shape=(
            jax.ShapeDtypeStruct((B_pad, S_pad, H), jnp.float32),
            jax.ShapeDtypeStruct((B_pad, H), jnp.float32),
            jax.ShapeDtypeStruct((B_pad, H), jnp.float32),
        ),
        compiler_params=pltpu.CompilerParams(
            dimension_semantics=("parallel", "arbitrary"),
            vmem_limit_bytes=vmem_limit),
    )(x_proj, whh)

    outputs = outputs[:B, :S, :]
    return outputs, (h_n[None, :B, :], c_n[None, :B, :])


def _reference_forward(x_ids, emb_table, w_ih, w_hh, b_ih, b_hh):
    """Pure-JAX f32 reference matching nn.Embedding + nn.LSTM(batch_first=True, 1 layer)."""
    embedded = emb_table[x_ids]                                        # (B, S, H)
    B, S, H = embedded.shape

    def step(carry, x_t):
        h, c = carry
        gates = x_t @ w_ih.T + b_ih + h @ w_hh.T + b_hh
        i_g = jax.nn.sigmoid(gates[:, 0 * H:1 * H])
        f_g = jax.nn.sigmoid(gates[:, 1 * H:2 * H])
        g_g = jnp.tanh(gates[:, 2 * H:3 * H])
        o_g = jax.nn.sigmoid(gates[:, 3 * H:4 * H])
        c = f_g * c + i_g * g_g
        h = o_g * jnp.tanh(c)
        return (h, c), h

    (h_n, c_n), outs = jax.lax.scan(
        step,
        (jnp.zeros((B, H), jnp.float32), jnp.zeros((B, H), jnp.float32)),
        jnp.transpose(embedded, (1, 0, 2)),
    )
    return jnp.transpose(outs, (1, 0, 2)), (h_n[None], c_n[None])


if __name__ == "__main__":
    def init_params(key, input_size, hidden):
        k_emb, k_wih, k_whh, k_bih, k_bhh = jax.random.split(key, 5)
        stdv = 1.0 / jnp.sqrt(hidden)
        emb = jax.random.normal(k_emb, (input_size, hidden), jnp.float32)
        w_ih = jax.random.uniform(k_wih, (4 * hidden, hidden), jnp.float32, -stdv, stdv)
        w_hh = jax.random.uniform(k_whh, (4 * hidden, hidden), jnp.float32, -stdv, stdv)
        b_ih = jax.random.uniform(k_bih, (4 * hidden,), jnp.float32, -stdv, stdv)
        b_hh = jax.random.uniform(k_bhh, (4 * hidden,), jnp.float32, -stdv, stdv)
        return emb, w_ih, w_hh, b_ih, b_hh

    key = jax.random.PRNGKey(0)
    k1, k2, kx1, kx2 = jax.random.split(key, 4)

    fwd = jax.jit(encoder_forward)

    cases = [
        # Module-default small shapes: vocab (input_size)=16, hidden=32, batch=2, seq=8.
        dict(input_size=16, hidden=32, B=2, S=8, kp=k1, kx=kx1),
        # Exercises time-chunking (S > Tc), batch padding / two batch blocks,
        # lane-aligned gates (H multiple of 128), and the pad-tail masking path.
        dict(input_size=50, hidden=128, B=20, S=40, kp=k2, kx=kx2),
    ]

    for cfg in cases:
        params = init_params(cfg["kp"], cfg["input_size"], cfg["hidden"])
        x_ids = jax.random.randint(cfg["kx"], (cfg["B"], cfg["S"]), 0,
                                   cfg["input_size"], jnp.int32)

        outputs, (h_n, c_n) = fwd(x_ids, *params)
        jax.block_until_ready((outputs, h_n, c_n))

        ref_out, (ref_h, ref_c) = _reference_forward(x_ids, *params)
        assert outputs.shape == (cfg["B"], cfg["S"], cfg["hidden"])
        assert h_n.shape == (1, cfg["B"], cfg["hidden"])
        assert c_n.shape == (1, cfg["B"], cfg["hidden"])
        # bf16 matmul operands / bf16-streamed x_proj (f32 accumulate & gate math)
        # -> tolerance loosened from 1e-5 accordingly.
        assert jnp.allclose(outputs, ref_out, atol=5e-2), "outputs mismatch"
        assert jnp.allclose(h_n, ref_h, atol=5e-2), "hidden mismatch"
        assert jnp.allclose(c_n, ref_c, atol=5e-2), "cell mismatch"

    print("KERNEL_OK")
</pallas_src>

<mosaic_0001>
module attributes {stable_mosaic.version = 11 : i64} {
  func.func @_lstm_chunk_kernel(%arg0: i32, %arg1: i32, %arg2: memref<8x8x128xbf16, #tpu.memory_space<vmem>>, %arg3: memref<32x128xbf16, #tpu.memory_space<vmem>>, %arg4: memref<8x8x32xf32, #tpu.memory_space<vmem>>, %arg5: memref<8x32xf32, #tpu.memory_space<vmem>>, %arg6: memref<8x32xf32, #tpu.memory_space<vmem>>) attributes {dimension_semantics = [#tpu.dimension_semantics<parallel>, #tpu.dimension_semantics<arbitrary>], iteration_bounds = array<i64: 1, 1>, scalar_prefetch = 0 : i64, scratch_operands = 0 : i64, tpu.core_type = #tpu.core_type<tc>, window_params = [{transform_indices = @transform_0, window_bounds = array<i64: 8, 8, 128>}, {pipeline_mode = #tpu.pipeline_mode<synchronous>, transform_indices = @transform_1, window_bounds = array<i64: 32, 128>}, {transform_indices = @transform_2, window_bounds = array<i64: 8, 8, 32>}, {transform_indices = @transform_3, window_bounds = array<i64: 8, 32>}, {transform_indices = @transform_4, window_bounds = array<i64: 8, 32>}]} {
    %c0_i32 = arith.constant 0 : i32
    %0 = arith.cmpi eq, %arg1, %c0_i32 : i32
    %1 = arith.extui %0 : i1 to i32
    %c0_i32_0 = arith.constant 0 : i32
    %2 = arith.cmpi ne, %1, %c0_i32_0 : i32
    scf.if %2 {
      %cst_130 = arith.constant 0.000000e+00 : f32
      %328 = vector.broadcast %cst_130 : f32 to vector<8x32xf32>
      %c0_131 = arith.constant 0 : index
      %c0_132 = arith.constant 0 : index
      %329 = vector.load %arg5[%c0_131, %c0_132] : memref<8x32xf32, #tpu.memory_space<vmem>>, vector<8x32xf32>
      tpu.vector_store %arg5[%c0_131, %c0_132], %328 {strides = array<i32>} : memref<8x32xf32, #tpu.memory_space<vmem>>, vector<8x32xf32>,
      %cst_133 = arith.constant 0.000000e+00 : f32
      %330 = vector.broadcast %cst_133 : f32 to vector<8x32xf32>
      %c0_134 = arith.constant 0 : index
      %c0_135 = arith.constant 0 : index
      %331 = vector.load %arg6[%c0_134, %c0_135] : memref<8x32xf32, #tpu.memory_space<vmem>>, vector<8x32xf32>
      tpu.vector_store %arg6[%c0_134, %c0_135], %330 {strides = array<i32>} : memref<8x32xf32, #tpu.memory_space<vmem>>, vector<8x32xf32>,
    } else {
    }
    %c0 = arith.constant 0 : index
    %c0_1 = arith.constant 0 : index
    %3 = vector.load %arg5[%c0, %c0_1] : memref<8x32xf32, #tpu.memory_space<vmem>>, vector<8x32xf32>
    %c0_2 = arith.constant 0 : index
    %c0_3 = arith.constant 0 : index
    %4 = vector.load %arg6[%c0_2, %c0_3] : memref<8x32xf32, #tpu.memory_space<vmem>>, vector<8x32xf32>
    %c0_4 = arith.constant 0 : index
    %c0_5 = arith.constant 0 : index
    %5 = vector.load %arg3[%c0_4, %c0_5] : memref<32x128xbf16, #tpu.memory_space<vmem>>, vector<32x128xbf16>
    %c0_6 = arith.constant 0 : index
    %c0_7 = arith.constant 0 : index
    %c0_8 = arith.constant 0 : index
    %6 = vector.load %arg2[%c0_6, %c0_7, %c0_8] : memref<8x8x128xbf16, #tpu.memory_space<vmem>>, vector<1x8x128xbf16>
    %7 = vector.shape_cast %6 : vector<1x8x128xbf16> to vector<8x128xbf16>
    %8 = arith.extf %7 : vector<8x128xbf16> to vector<8x128xf32>
    %9 = arith.truncf %3 : vector<8x32xf32> to vector<8x32xbf16>
    %cst = arith.constant dense<0.000000e+00> : vector<8x128xf32>
    %10 = tpu.matmul %9, %5, %cst {dimension_numbers = #tpu.dot_dimension_numbers<[1], [0], [0], [1], [0, 0, 1, 1], [], []>} : vector<8x32xbf16>, vector<32x128xbf16>, vector<8x128xf32> -> vector<8x128xf32>
    %11 = arith.addf %8, %10 : vector<8x128xf32>
    %12 = vector.extract_strided_slice %11 {offsets = [0, 0], sizes = [8, 32], strides = [1, 1]} : vector<8x128xf32> to vector<8x32xf32>
    %cst_9 = arith.constant 5.000000e-01 : f32
    %13 = vector.broadcast %cst_9 : f32 to vector<8x32xf32>
    %14 = arith.mulf %13, %12 : vector<8x32xf32>
    %15 = math.tanh %14 : vector<8x32xf32>
    %cst_10 = arith.constant 5.000000e-01 : f32
    %16 = vector.broadcast %cst_10 : f32 to vector<8x32xf32>
    %17 = arith.mulf %16, %15 : vector<8x32xf32>
    %cst_11 = arith.constant 5.000000e-01 : f32
    %18 = vector.broadcast %cst_11 : f32 to vector<8x32xf32>
    %19 = arith.addf %17, %18 : vector<8x32xf32>
    %20 = vector.extract_strided_slice %11 {offsets = [0, 32], sizes = [8, 32], strides = [1, 1]} : vector<8x128xf32> to vector<8x32xf32>
    %cst_12 = arith.constant 5.000000e-01 : f32
    %21 = vector.broadcast %cst_12 : f32 to vector<8x32xf32>
    %22 = arith.mulf %21, %20 : vector<8x32xf32>
    %23 = math.tanh %22 : vector<8x32xf32>
    %cst_13 = arith.constant 5.000000e-01 : f32
    %24 = vector.broadcast %cst_13 : f32 to vector<8x32xf32>
    %25 = arith.mulf %24, %23 : vector<8x32xf32>
    %cst_14 = arith.constant 5.000000e-01 : f32
    %26 = vector.broadcast %cst_14 : f32 to vector<8x32xf32>
    %27 = arith.addf %25, %26 : vector<8x32xf32>
    %28 = vector.extract_strided_slice %11 {offsets = [0, 64], sizes = [8, 32], strides = [1, 1]} : vector<8x128xf32> to vector<8x32xf32>
    %29 = math.tanh %28 : vector<8x32xf32>
    %30 = vector.extract_strided_slice %11 {offsets = [0, 96], sizes = [8, 32], strides = [1, 1]} : vector<8x128xf32> to vector<8x32xf32>
    %cst_15 = arith.constant 5.000000e-01 : f32
    %31 = vector.broadcast %cst_15 : f32 to vector<8x32xf32>
    %32 = arith.mulf %31, %30 : vector<8x32xf32>
    %33 = math.tanh %32 : vector<8x32xf32>
    %cst_16 = arith.constant 5.000000e-01 : f32
    %34 = vector.broadcast %cst_16 : f32 to vector<8x32xf32>
    %35 = arith.mulf %34, %33 : vector<8x32xf32>
    %cst_17 = arith.constant 5.000000e-01 : f32
    %36 = vector.broadcast %cst_17 : f32 to vector<8x32xf32>
    %37 = arith.addf %35, %36 : vector<8x32xf32>
    %38 = arith.mulf %27, %4 : vector<8x32xf32>
    %39 = arith.mulf %19, %29 : vector<8x32xf32>
    %40 = arith.addf %38, %39 : vector<8x32xf32>
    %41 = math.tanh %40 : vector<8x32xf32>
    %42 = arith.mulf %37, %41 : vector<8x32xf32>
    %c0_18 = arith.constant 0 : index
    %c0_19 = arith.constant 0 : index
    %c0_20 = arith.constant 0 : index
    %43 = vector.load %arg4[%c0_18, %c0_19, %c0_20] : memref<8x8x32xf32, #tpu.memory_space<vmem>>, vector<8x1x32xf32>
    %44 = vector.shape_cast %43 : vector<8x1x32xf32> to vector<8x32xf32>
    %45 = vector.shape_cast %42 : vector<8x32xf32> to vector<8x1x32xf32>
    tpu.vector_store %arg4[%c0_18, %c0_19, %c0_20], %45 {strides = array<i32>} : memref<8x8x32xf32, #tpu.memory_space<vmem>>, vector<8x1x32xf32>,
    %c1 = arith.constant 1 : index
    %c0_21 = arith.constant 0 : index
    %c0_22 = arith.constant 0 : index
    %46 = vector.load %arg2[%c1, %c0_21, %c0_22] : memref<8x8x128xbf16, #tpu.memory_space<vmem>>, vector<1x8x128xbf16>
    %47 = vector.shape_cast %46 : vector<1x8x128xbf16> to vector<8x128xbf16>
    %48 = arith.extf %47 : vector<8x128xbf16> to vector<8x128xf32>
    %49 = arith.truncf %42 : vector<8x32xf32> to vector<8x32xbf16>
    %cst_23 = arith.constant dense<0.000000e+00> : vector<8x128xf32>
    %50 = tpu.matmul %49, %5, %cst_23 {dimension_numbers = #tpu.dot_dimension_numbers<[1], [0], [0], [1], [0, 0, 1, 1], [], []>} : vector<8x32xbf16>, vector<32x128xbf16>, vector<8x128xf32> -> vector<8x128xf32>
    %51 = arith.addf %48, %50 : vector<8x128xf32>
    %52 = vector.extract_strided_slice %51 {offsets = [0, 0], sizes = [8, 32], strides = [1, 1]} : vector<8x128xf32> to vector<8x32xf32>
    %cst_24 = arith.constant 5.000000e-01 : f32
    %53 = vector.broadcast %cst_24 : f32 to vector<8x32xf32>
    %54 = arith.mulf %53, %52 : vector<8x32xf32>
    %55 = math.tanh %54 : vector<8x32xf32>
    %cst_25 = arith.constant 5.000000e-01 : f32
    %56 = vector.broadcast %cst_25 : f32 to vector<8x32xf32>
    %57 = arith.mulf %56, %55 : vector<8x32xf32>
    %cst_26 = arith.constant 5.000000e-01 : f32
    %58 = vector.broadcast %cst_26 : f32 to vector<8x32xf32>
    %59 = arith.addf %57, %58 : vector<8x32xf32>
    %60 = vector.extract_strided_slice %51 {offsets = [0, 32], sizes = [8, 32], strides = [1, 1]} : vector<8x128xf32> to vector<8x32xf32>
    %cst_27 = arith.constant 5.000000e-01 : f32
    %61 = vector.broadcast %cst_27 : f32 to vector<8x32xf32>
    %62 = arith.mulf %61, %60 : vector<8x32xf32>
    %63 = math.tanh %62 : vector<8x32xf32>
    %cst_28 = arith.constant 5.000000e-01 : f32
    %64 = vector.broadcast %cst_28 : f32 to vector<8x32xf32>
    %65 = arith.mulf %64, %63 : vector<8x32xf32>
    %cst_29 = arith.constant 5.000000e-01 : f32
    %66 = vector.broadcast %cst_29 : f32 to vector<8x32xf32>
    %67 = arith.addf %65, %66 : vector<8x32xf32>
    %68 = vector.extract_strided_slice %51 {offsets = [0, 64], sizes = [8, 32], strides = [1, 1]} : vector<8x128xf32> to vector<8x32xf32>
    %69 = math.tanh %68 : vector<8x32xf32>
    %70 = vector.extract_strided_slice %51 {offsets = [0, 96], sizes = [8, 32], strides = [1, 1]} : vector<8x128xf32> to vector<8x32xf32>
    %cst_30 = arith.constant 5.000000e-01 : f32
    %71 = vector.broadcast %cst_30 : f32 to vector<8x32xf32>
    %72 = arith.mulf %71, %70 : vector<8x32xf32>
    %73 = math.tanh %72 : vector<8x32xf32>
    %cst_31 = arith.constant 5.000000e-01 : f32
    %74 = vector.broadcast %cst_31 : f32 to vector<8x32xf32>
    %75 = arith.mulf %74, %73 : vector<8x32xf32>
    %cst_32 = arith.constant 5.000000e-01 : f32
    %76 = vector.broadcast %cst_32 : f32 to vector<8x32xf32>
    %77 = arith.addf %75, %76 : vector<8x32xf32>
    %78 = arith.mulf %67, %40 : vector<8x32xf32>
    %79 = arith.mulf %59, %69 : vector<8x32xf32>
    %80 = arith.addf %78, %79 : vector<8x32xf32>
    %81 = math.tanh %80 : vector<8x32xf32>
    %82 = arith.mulf %77, %81 : vector<8x32xf32>
    %c0_33 = arith.constant 0 : index
    %c1_34 = arith.constant 1 : index
    %c0_35 = arith.constant 0 : index
    %83 = vector.load %arg4[%c0_33, %c1_34, %c0_35] : memref<8x8x32xf32, #tpu.memory_space<vmem>>, vector<8x1x32xf32>
    %84 = vector.shape_cast %83 : vector<8x1x32xf32> to vector<8x32xf32>
    %85 = vector.shape_cast %82 : vector<8x32xf32> to vector<8x1x32xf32>
    tpu.vector_store %arg4[%c0_33, %c1_34, %c0_35], %85 {strides = array<i32>} : memref<8x8x32xf32, #tpu.memory_space<vmem>>, vector<8x1x32xf32>,
    %c2 = arith.constant 2 : index
    %c0_36 = arith.constant 0 : index
    %c0_37 = arith.constant 0 : index
    %86 = vector.load %arg2[%c2, %c0_36, %c0_37] : memref<8x8x128xbf16, #tpu.memory_space<vmem>>, vector<1x8x128xbf16>
    %87 = vector.shape_cast %86 : vector<1x8x128xbf16> to vector<8x128xbf16>
    %88 = arith.extf %87 : vector<8x128xbf16> to vector<8x128xf32>
    %89 = arith.truncf %82 : vector<8x32xf32> to vector<8x32xbf16>
    %cst_38 = arith.constant dense<0.000000e+00> : vector<8x128xf32>
    %90 = tpu.matmul %89, %5, %cst_38 {dimension_numbers = #tpu.dot_dimension_numbers<[1], [0], [0], [1], [0, 0, 1, 1], [], []>} : vector<8x32xbf16>, vector<32x128xbf16>, vector<8x128xf32> -> vector<8x128xf32>
    %91 = arith.addf %88, %90 : vector<8x128xf32>
    %92 = vector.extract_strided_slice %91 {offsets = [0, 0], sizes = [8, 32], strides = [1, 1]} : vector<8x128xf32> to vector<8x32xf32>
    %cst_39 = arith.constant 5.000000e-01 : f32
    %93 = vector.broadcast %cst_39 : f32 to vector<8x32xf32>
    %94 = arith.mulf %93, %92 : vector<8x32xf32>
    %95 = math.tanh %94 : vector<8x32xf32>
    %cst_40 = arith.constant 5.000000e-01 : f32
    %96 = vector.broadcast %cst_40 : f32 to vector<8x32xf32>
    %97 = arith.mulf %96, %95 : vector<8x32xf32>
    %cst_41 = arith.constant 5.000000e-01 : f32
    %98 = vector.broadcast %cst_41 : f32 to vector<8x32xf32>
    %99 = arith.addf %97, %98 : vector<8x32xf32>
    %100 = vector.extract_strided_slice %91 {offsets = [0, 32], sizes = [8, 32], strides = [1, 1]} : vector<8x128xf32> to vector<8x32xf32>
    %cst_42 = arith.constant 5.000000e-01 : f32
    %101 = vector.broadcast %cst_42 : f32 to vector<8x32xf32>
    %102 = arith.mulf %101, %100 : vector<8x32xf32>
    %103 = math.tanh %102 : vector<8x32xf32>
    %cst_43 = arith.constant 5.000000e-01 : f32
    %104 = vector.broadcast %cst_43 : f32 to vector<8x32xf32>
    %105 = arith.mulf %104, %103 : vector<8x32xf32>
    %cst_44 = arith.constant 5.000000e-01 : f32
    %106 = vector.broadcast %cst_44 : f32 to vector<8x32xf32>
    %107 = arith.addf %105, %106 : vector<8x32xf32>
    %108 = vector.extract_strided_slice %91 {offsets = [0, 64], sizes = [8, 32], strides = [1, 1]} : vector<8x128xf32> to vector<8x32xf32>
    %109 = math.tanh %108 : vector<8x32xf32>
    %110 = vector.extract_strided_slice %91 {offsets = [0, 96], sizes = [8, 32], strides = [1, 1]} : vector<8x128xf32> to vector<8x32xf32>
    %cst_45 = arith.constant 5.000000e-01 : f32
    %111 = vector.broadcast %cst_45 : f32 to vector<8x32xf32>
    %112 = arith.mulf %111, %110 : vector<8x32xf32>
    %113 = math.tanh %112 : vector<8x32xf32>
    %cst_46 = arith.constant 5.000000e-01 : f32
    %114 = vector.broadcast %cst_46 : f32 to vector<8x32xf32>
    %115 = arith.mulf %114, %113 : vector<8x32xf32>
    %cst_47 = arith.constant 5.000000e-01 : f32
    %116 = vector.broadcast %cst_47 : f32 to vector<8x32xf32>
    %117 = arith.addf %115, %116 : vector<8x32xf32>
    %118 = arith.mulf %107, %80 : vector<8x32xf32>
    %119 = arith.mulf %99, %109 : vector<8x32xf32>
    %120 = arith.addf %118, %119 : vector<8x32xf32>
    %121 = math.tanh %120 : vector<8x32xf32>
    %122 = arith.mulf %117, %121 : vector<8x32xf32>
    %c0_48 = arith.constant 0 : index
    %c2_49 = arith.constant 2 : index
    %c0_50 = arith.constant 0 : index
    %123 = vector.load %arg4[%c0_48, %c2_49, %c0_50] : memref<8x8x32xf32, #tpu.memory_space<vmem>>, vector<8x1x32xf32>
    %124 = vector.shape_cast %123 : vector<8x1x32xf32> to vector<8x32xf32>
    %125 = vector.shape_cast %122 : vector<8x32xf32> to vector<8x1x32xf32>
    tpu.vector_store %arg4[%c0_48, %c2_49, %c0_50], %125 {strides = array<i32>} : memref<8x8x32xf32, #tpu.memory_space<vmem>>, vector<8x1x32xf32>,
    %c3 = arith.constant 3 : index
    %c0_51 = arith.constant 0 : index
    %c0_52 = arith.constant 0 : index
    %126 = vector.load %arg2[%c3, %c0_51, %c0_52] : memref<8x8x128xbf16, #tpu.memory_space<vmem>>, vector<1x8x128xbf16>
    %127 = vector.shape_cast %126 : vector<1x8x128xbf16> to vector<8x128xbf16>
    %128 = arith.extf %127 : vector<8x128xbf16> to vector<8x128xf32>
    %129 = arith.truncf %122 : vector<8x32xf32> to vector<8x32xbf16>
    %cst_53 = arith.constant dense<0.000000e+00> : vector<8x128xf32>
    %130 = tpu.matmul %129, %5, %cst_53 {dimension_numbers = #tpu.dot_dimension_numbers<[1], [0], [0], [1], [0, 0, 1, 1], [], []>} : vector<8x32xbf16>, vector<32x128xbf16>, vector<8x128xf32> -> vector<8x128xf32>
    %131 = arith.addf %128, %130 : vector<8x128xf32>
    %132 = vector.extract_strided_slice %131 {offsets = [0, 0], sizes = [8, 32], strides = [1, 1]} : vector<8x128xf32> to vector<8x32xf32>
    %cst_54 = arith.constant 5.000000e-01 : f32
    %133 = vector.broadcast %cst_54 : f32 to vector<8x32xf32>
    %134 = arith.mulf %133, %132 : vector<8x32xf32>
    %135 = math.tanh %134 : vector<8x32xf32>
    %cst_55 = arith.constant 5.000000e-01 : f32
    %136 = vector.broadcast %cst_55 : f32 to vector<8x32xf32>
    %137 = arith.mulf %136, %135 : vector<8x32xf32>
    %cst_56 = arith.constant 5.000000e-01 : f32
    %138 = vector.broadcast %cst_56 : f32 to vector<8x32xf32>
    %139 = arith.addf %137, %138 : vector<8x32xf32>
    %140 = vector.extract_strided_slice %131 {offsets = [0, 32], sizes = [8, 32], strides = [1, 1]} : vector<8x128xf32> to vector<8x32xf32>
    %cst_57 = arith.constant 5.000000e-01 : f32
    %141 = vector.broadcast %cst_57 : f32 to vector<8x32xf32>
    %142 = arith.mulf %141, %140 : vector<8x32xf32>
    %143 = math.tanh %142 : vector<8x32xf32>
    %cst_58 = arith.constant 5.000000e-01 : f32
    %144 = vector.broadcast %cst_58 : f32 to vector<8x32xf32>
    %145 = arith.mulf %144, %143 : vector<8x32xf32>
    %cst_59 = arith.constant 5.000000e-01 : f32
    %146 = vector.broadcast %cst_59 : f32 to vector<8x32xf32>
    %147 = arith.addf %145, %146 : vector<8x32xf32>
    %148 = vector.extract_strided_slice %131 {offsets = [0, 64], sizes = [8, 32], strides = [1, 1]} : vector<8x128xf32> to vector<8x32xf32>
    %149 = math.tanh %148 : vector<8x32xf32>
    %150 = vector.extract_strided_slice %131 {offsets = [0, 96], sizes = [8, 32], strides = [1, 1]} : vector<8x128xf32> to vector<8x32xf32>
    %cst_60 = arith.constant 5.000000e-01 : f32
    %151 = vector.broadcast %cst_60 : f32 to vector<8x32xf32>
    %152 = arith.mulf %151, %150 : vector<8x32xf32>
    %153 = math.tanh %152 : vector<8x32xf32>
    %cst_61 = arith.constant 5.000000e-01 : f32
    %154 = vector.broadcast %cst_61 : f32 to vector<8x32xf32>
    %155 = arith.mulf %154, %153 : vector<8x32xf32>
    %cst_62 = arith.constant 5.000000e-01 : f32
    %156 = vector.broadcast %cst_62 : f32 to vector<8x32xf32>
    %157 = arith.addf %155, %156 : vector<8x32xf32>
    %158 = arith.mulf %147, %120 : vector<8x32xf32>
    %159 = arith.mulf %139, %149 : vector<8x32xf32>
    %160 = arith.addf %158, %159 : vector<8x32xf32>
    %161 = math.tanh %160 : vector<8x32xf32>
    %162 = arith.mulf %157, %161 : vector<8x32xf32>
    %c0_63 = arith.constant 0 : index
    %c3_64 = arith.constant 3 : index
    %c0_65 = arith.constant 0 : index
    %163 = vector.load %arg4[%c0_63, %c3_64, %c0_65] : memref<8x8x32xf32, #tpu.memory_space<vmem>>, vector<8x1x32xf32>
    %164 = vector.shape_cast %163 : vector<8x1x32xf32> to vector<8x32xf32>
    %165 = vector.shape_cast %162 : vector<8x32xf32> to vector<8x1x32xf32>
    tpu.vector_store %arg4[%c0_63, %c3_64, %c0_65], %165 {strides = array<i32>} : memref<8x8x32xf32, #tpu.memory_space<vmem>>, vector<8x1x32xf32>,
    %c4 = arith.constant 4 : index
    %c0_66 = arith.constant 0 : index
    %c0_67 = arith.constant 0 : index
    %166 = vector.load %arg2[%c4, %c0_66, %c0_67] : memref<8x8x128xbf16, #tpu.memory_space<vmem>>, vector<1x8x128xbf16>
    %167 = vector.shape_cast %166 : vector<1x8x128xbf16> to vector<8x128xbf16>
    %168 = arith.extf %167 : vector<8x128xbf16> to vector<8x128xf32>
    %169 = arith.truncf %162 : vector<8x32xf32> to vector<8x32xbf16>
    %cst_68 = arith.constant dense<0.000000e+00> : vector<8x128xf32>
    %170 = tpu.matmul %169, %5, %cst_68 {dimension_numbers = #tpu.dot_dimension_numbers<[1], [0], [0], [1], [0, 0, 1, 1], [], []>} : vector<8x32xbf16>, vector<32x128xbf16>, vector<8x128xf32> -> vector<8x128xf32>
    %171 = arith.addf %168, %170 : vector<8x128xf32>
    %172 = vector.extract_strided_slice %171 {offsets = [0, 0], sizes = [8, 32], strides = [1, 1]} : vector<8x128xf32> to vector<8x32xf32>
    %cst_69 = arith.constant 5.000000e-01 : f32
    %173 = vector.broadcast %cst_69 : f32 to vector<8x32xf32>
    %174 = arith.mulf %173, %172 : vector<8x32xf32>
    %175 = math.tanh %174 : vector<8x32xf32>
    %cst_70 = arith.constant 5.000000e-01 : f32
    %176 = vector.broadcast %cst_70 : f32 to vector<8x32xf32>
    %177 = arith.mulf %176, %175 : vector<8x32xf32>
    %cst_71 = arith.constant 5.000000e-01 : f32
    %178 = vector.broadcast %cst_71 : f32 to vector<8x32xf32>
    %179 = arith.addf %177, %178 : vector<8x32xf32>
    %180 = vector.extract_strided_slice %171 {offsets = [0, 32], sizes = [8, 32], strides = [1, 1]} : vector<8x128xf32> to vector<8x32xf32>
    %cst_72 = arith.constant 5.000000e-01 : f32
    %181 = vector.broadcast %cst_72 : f32 to vector<8x32xf32>
    %182 = arith.mulf %181, %180 : vector<8x32xf32>
    %183 = math.tanh %182 : vector<8x32xf32>
    %cst_73 = arith.constant 5.000000e-01 : f32
    %184 = vector.broadcast %cst_73 : f32 to vector<8x32xf32>
    %185 = arith.mulf %184, %183 : vector<8x32xf32>
    %cst_74 = arith.constant 5.000000e-01 : f32
    %186 = vector.broadcast %cst_74 : f32 to vector<8x32xf32>
    %187 = arith.addf %185, %186 : vector<8x32xf32>
    %188 = vector.extract_strided_slice %171 {offsets = [0, 64], sizes = [8, 32], strides = [1, 1]} : vector<8x128xf32> to vector<8x32xf32>
    %189 = math.tanh %188 : vector<8x32xf32>
    %190 = vector.extract_strided_slice %171 {offsets = [0, 96], sizes = [8, 32], strides = [1, 1]} : vector<8x128xf32> to vector<8x32xf32>
    %cst_75 = arith.constant 5.000000e-01 : f32
    %191 = vector.broadcast %cst_75 : f32 to vector<8x32xf32>
    %192 = arith.mulf %191, %190 : vector<8x32xf32>
    %193 = math.tanh %192 : vector<8x32xf32>
    %cst_76 = arith.constant 5.000000e-01 : f32
    %194 = vector.broadcast %cst_76 : f32 to vector<8x32xf32>
    %195 = arith.mulf %194, %193 : vector<8x32xf32>
    %cst_77 = arith.constant 5.000000e-01 : f32
    %196 = vector.broadcast %cst_77 : f32 to vector<8x32xf32>
    %197 = arith.addf %195, %196 : vector<8x32xf32>
    %198 = arith.mulf %187, %160 : vector<8x32xf32>
    %199 = arith.mulf %179, %189 : vector<8x32xf32>
    %200 = arith.addf %198, %199 : vector<8x32xf32>
    %201 = math.tanh %200 : vector<8x32xf32>
    %202 = arith.mulf %197, %201 : vector<8x32xf32>
    %c0_78 = arith.constant 0 : index
    %c4_79 = arith.constant 4 : index
    %c0_80 = arith.constant 0 : index
    %203 = vector.load %arg4[%c0_78, %c4_79, %c0_80] : memref<8x8x32xf32, #tpu.memory_space<vmem>>, vector<8x1x32xf32>
    %204 = vector.shape_cast %203 : vector<8x1x32xf32> to vector<8x32xf32>
    %205 = vector.shape_cast %202 : vector<8x32xf32> to vector<8x1x32xf32>
    tpu.vector_store %arg4[%c0_78, %c4_79, %c0_80], %205 {strides = array<i32>} : memref<8x8x32xf32, #tpu.memory_space<vmem>>, vector<8x1x32xf32>,
    %c5 = arith.constant 5 : index
    %c0_81 = arith.constant 0 : index
    %c0_82 = arith.constant 0 : index
    %206 = vector.load %arg2[%c5, %c0_81, %c0_82] : memref<8x8x128xbf16, #tpu.memory_space<vmem>>, vector<1x8x128xbf16>
    %207 = vector.shape_cast %206 : vector<1x8x128xbf16> to vector<8x128xbf16>
    %208 = arith.extf %207 : vector<8x128xbf16> to vector<8x128xf32>
    %209 = arith.truncf %202 : vector<8x32xf32> to vector<8x32xbf16>
    %cst_83 = arith.constant dense<0.000000e+00> : vector<8x128xf32>
    %210 = tpu.matmul %209, %5, %cst_83 {dimension_numbers = #tpu.dot_dimension_numbers<[1], [0], [0], [1], [0, 0, 1, 1], [], []>} : vector<8x32xbf16>, vector<32x128xbf16>, vector<8x128xf32> -> vector<8x128xf32>
    %211 = arith.addf %208, %210 : vector<8x128xf32>
    %212 = vector.extract_strided_slice %211 {offsets = [0, 0], sizes = [8, 32], strides = [1, 1]} : vector<8x128xf32> to vector<8x32xf32>
    %cst_84 = arith.constant 5.000000e-01 : f32
    %213 = vector.broadcast %cst_84 : f32 to vector<8x32xf32>
    %214 = arith.mulf %213, %212 : vector<8x32xf32>
    %215 = math.tanh %214 : vector<8x32xf32>
    %cst_85 = arith.constant 5.000000e-01 : f32
    %216 = vector.broadcast %cst_85 : f32 to vector<8x32xf32>
    %217 = arith.mulf %216, %215 : vector<8x32xf32>
    %cst_86 = arith.constant 5.000000e-01 : f32
    %218 = vector.broadcast %cst_86 : f32 to vector<8x32xf32>
    %219 = arith.addf %217, %218 : vector<8x32xf32>
    %220 = vector.extract_strided_slice %211 {offsets = [0, 32], sizes = [8, 32], strides = [1, 1]} : vector<8x128xf32> to vector<8x32xf32>
    %cst_87 = arith.constant 5.000000e-01 : f32
    %221 = vector.broadcast %cst_87 : f32 to vector<8x32xf32>
    %222 = arith.mulf %221, %220 : vector<8x32xf32>
    %223 = math.tanh %222 : vector<8x32xf32>
    %cst_88 = arith.constant 5.000000e-01 : f32
    %224 = vector.broadcast %cst_88 : f32 to vector<8x32xf32>
    %225 = arith.mulf %224, %223 : vector<8x32xf32>
    %cst_89 = arith.constant 5.000000e-01 : f32
    %226 = vector.broadcast %cst_89 : f32 to vector<8x32xf32>
    %227 = arith.addf %225, %226 : vector<8x32xf32>
    %228 = vector.extract_strided_slice %211 {offsets = [0, 64], sizes = [8, 32], strides = [1, 1]} : vector<8x128xf32> to vector<8x32xf32>
    %229 = math.tanh %228 : vector<8x32xf32>
    %230 = vector.extract_strided_slice %211 {offsets = [0, 96], sizes = [8, 32], strides = [1, 1]} : vector<8x128xf32> to vector<8x32xf32>
    %cst_90 = arith.constant 5.000000e-01 : f32
    %231 = vector.broadcast %cst_90 : f32 to vector<8x32xf32>
    %232 = arith.mulf %231, %230 : vector<8x32xf32>
    %233 = math.tanh %232 : vector<8x32xf32>
    %cst_91 = arith.constant 5.000000e-01 : f32
    %234 = vector.broadcast %cst_91 : f32 to vector<8x32xf32>
    %235 = arith.mulf %234, %233 : vector<8x32xf32>
    %cst_92 = arith.constant 5.000000e-01 : f32
    %236 = vector.broadcast %cst_92 : f32 to vector<8x32xf32>
    %237 = arith.addf %235, %236 : vector<8x32xf32>
    %238 = arith.mulf %227, %200 : vector<8x32xf32>
    %239 = arith.mulf %219, %229 : vector<8x32xf32>
    %240 = arith.addf %238, %239 : vector<8x32xf32>
    %241 = math.tanh %240 : vector<8x32xf32>
    %242 = arith.mulf %237, %241 : vector<8x32xf32>
    %c0_93 = arith.constant 0 : index
    %c5_94 = arith.constant 5 : index
    %c0_95 = arith.constant 0 : index
    %243 = vector.load %arg4[%c0_93, %c5_94, %c0_95] : memref<8x8x32xf32, #tpu.memory_space<vmem>>, vector<8x1x32xf32>
    %244 = vector.shape_cast %243 : vector<8x1x32xf32> to vector<8x32xf32>
    %245 = vector.shape_cast %242 : vector<8x32xf32> to vector<8x1x32xf32>
    tpu.vector_store %arg4[%c0_93, %c5_94, %c0_95], %245 {strides = array<i32>} : memref<8x8x32xf32, #tpu.memory_space<vmem>>, vector<8x1x32xf32>,
    %c6 = arith.constant 6 : index
    %c0_96 = arith.constant 0 : index
    %c0_97 = arith.constant 0 : index
    %246 = vector.load %arg2[%c6, %c0_96, %c0_97] : memref<8x8x128xbf16, #tpu.memory_space<vmem>>, vector<1x8x128xbf16>
    %247 = vector.shape_cast %246 : vector<1x8x128xbf16> to vector<8x128xbf16>
    %248 = arith.extf %247 : vector<8x128xbf16> to vector<8x128xf32>
    %249 = arith.truncf %242 : vector<8x32xf32> to vector<8x32xbf16>
    %cst_98 = arith.constant dense<0.000000e+00> : vector<8x128xf32>
    %250 = tpu.matmul %249, %5, %cst_98 {dimension_numbers = #tpu.dot_dimension_numbers<[1], [0], [0], [1], [0, 0, 1, 1], [], []>} : vector<8x32xbf16>, vector<32x128xbf16>, vector<8x128xf32> -> vector<8x128xf32>
    %251 = arith.addf %248, %250 : vector<8x128xf32>
    %252 = vector.extract_strided_slice %251 {offsets = [0, 0], sizes = [8, 32], strides = [1, 1]} : vector<8x128xf32> to vector<8x32xf32>
    %cst_99 = arith.constant 5.000000e-01 : f32
    %253 = vector.broadcast %cst_99 : f32 to vector<8x32xf32>
    %254 = arith.mulf %253, %252 : vector<8x32xf32>
    %255 = math.tanh %254 : vector<8x32xf32>
    %cst_100 = arith.constant 5.000000e-01 : f32
    %256 = vector.broadcast %cst_100 : f32 to vector<8x32xf32>
    %257 = arith.mulf %256, %255 : vector<8x32xf32>
    %cst_101 = arith.constant 5.000000e-01 : f32
    %258 = vector.broadcast %cst_101 : f32 to vector<8x32xf32>
    %259 = arith.addf %257, %258 : vector<8x32xf32>
    %260 = vector.extract_strided_slice %251 {offsets = [0, 32], sizes = [8, 32], strides = [1, 1]} : vector<8x128xf32> to vector<8x32xf32>
    %cst_102 = arith.constant 5.000000e-01 : f32
    %261 = vector.broadcast %cst_102 : f32 to vector<8x32xf32>
    %262 = arith.mulf %261, %260 : vector<8x32xf32>
    %263 = math.tanh %262 : vector<8x32xf32>
    %cst_103 = arith.constant 5.000000e-01 : f32
    %264 = vector.broadcast %cst_103 : f32 to vector<8x32xf32>
    %265 = arith.mulf %264, %263 : vector<8x32xf32>
    %cst_104 = arith.constant 5.000000e-01 : f32
    %266 = vector.broadcast %cst_104 : f32 to vector<8x32xf32>
    %267 = arith.addf %265, %266 : vector<8x32xf32>
    %268 = vector.extract_strided_slice %251 {offsets = [0, 64], sizes = [8, 32], strides = [1, 1]} : vector<8x128xf32> to vector<8x32xf32>
    %269 = math.tanh %268 : vector<8x32xf32>
    %270 = vector.extract_strided_slice %251 {offsets = [0, 96], sizes = [8, 32], strides = [1, 1]} : vector<8x128xf32> to vector<8x32xf32>
    %cst_105 = arith.constant 5.000000e-01 : f32
    %271 = vector.broadcast %cst_105 : f32 to vector<8x32xf32>
    %272 = arith.mulf %271, %270 : vector<8x32xf32>
    %273 = math.tanh %272 : vector<8x32xf32>
    %cst_106 = arith.constant 5.000000e-01 : f32
    %274 = vector.broadcast %cst_106 : f32 to vector<8x32xf32>
    %275 = arith.mulf %274, %273 : vector<8x32xf32>
    %cst_107 = arith.constant 5.000000e-01 : f32
    %276 = vector.broadcast %cst_107 : f32 to vector<8x32xf32>
    %277 = arith.addf %275, %276 : vector<8x32xf32>
    %278 = arith.mulf %267, %240 : vector<8x32xf32>
    %279 = arith.mulf %259, %269 : vector<8x32xf32>
    %280 = arith.addf %278, %279 : vector<8x32xf32>
    %281 = math.tanh %280 : vector<8x32xf32>
    %282 = arith.mulf %277, %281 : vector<8x32xf32>
    %c0_108 = arith.constant 0 : index
    %c6_109 = arith.constant 6 : index
    %c0_110 = arith.constant 0 : index
    %283 = vector.load %arg4[%c0_108, %c6_109, %c0_110] : memref<8x8x32xf32, #tpu.memory_space<vmem>>, vector<8x1x32xf32>
    %284 = vector.shape_cast %283 : vector<8x1x32xf32> to vector<8x32xf32>
    %285 = vector.shape_cast %282 : vector<8x32xf32> to vector<8x1x32xf32>
    tpu.vector_store %arg4[%c0_108, %c6_109, %c0_110], %285 {strides = array<i32>} : memref<8x8x32xf32, #tpu.memory_space<vmem>>, vector<8x1x32xf32>,
    %c7 = arith.constant 7 : index
    %c0_111 = arith.constant 0 : index
    %c0_112 = arith.constant 0 : index
    %286 = vector.load %arg2[%c7, %c0_111, %c0_112] : memref<8x8x128xbf16, #tpu.memory_space<vmem>>, vector<1x8x128xbf16>
    %287 = vector.shape_cast %286 : vector<1x8x128xbf16> to vector<8x128xbf16>
    %288 = arith.extf %287 : vector<8x128xbf16> to vector<8x128xf32>
    %289 = arith.truncf %282 : vector<8x32xf32> to vector<8x32xbf16>
    %cst_113 = arith.constant dense<0.000000e+00> : vector<8x128xf32>
    %290 = tpu.matmul %289, %5, %cst_113 {dimension_numbers = #tpu.dot_dimension_numbers<[1], [0], [0], [1], [0, 0, 1, 1], [], []>} : vector<8x32xbf16>, vector<32x128xbf16>, vector<8x128xf32> -> vector<8x128xf32>
    %291 = arith.addf %288, %290 : vector<8x128xf32>
    %292 = vector.extract_strided_slice %291 {offsets = [0, 0], sizes = [8, 32], strides = [1, 1]} : vector<8x128xf32> to vector<8x32xf32>
    %cst_114 = arith.constant 5.000000e-01 : f32
    %293 = vector.broadcast %cst_114 : f32 to vector<8x32xf32>
    %294 = arith.mulf %293, %292 : vector<8x32xf32>
    %295 = math.tanh %294 : vector<8x32xf32>
    %cst_115 = arith.constant 5.000000e-01 : f32
    %296 = vector.broadcast %cst_115 : f32 to vector<8x32xf32>
    %297 = arith.mulf %296, %295 : vector<8x32xf32>
    %cst_116 = arith.constant 5.000000e-01 : f32
    %298 = vector.broadcast %cst_116 : f32 to vector<8x32xf32>
    %299 = arith.addf %297, %298 : vector<8x32xf32>
    %300 = vector.extract_strided_slice %291 {offsets = [0, 32], sizes = [8, 32], strides = [1, 1]} : vector<8x128xf32> to vector<8x32xf32>
    %cst_117 = arith.constant 5.000000e-01 : f32
    %301 = vector.broadcast %cst_117 : f32 to vector<8x32xf32>
    %302 = arith.mulf %301, %300 : vector<8x32xf32>
    %303 = math.tanh %302 : vector<8x32xf32>
    %cst_118 = arith.constant 5.000000e-01 : f32
    %304 = vector.broadcast %cst_118 : f32 to vector<8x32xf32>
    %305 = arith.mulf %304, %303 : vector<8x32xf32>
    %cst_119 = arith.constant 5.000000e-01 : f32
    %306 = vector.broadcast %cst_119 : f32 to vector<8x32xf32>
    %307 = arith.addf %305, %306 : vector<8x32xf32>
    %308 = vector.extract_strided_slice %291 {offsets = [0, 64], sizes = [8, 32], strides = [1, 1]} : vector<8x128xf32> to vector<8x32xf32>
    %309 = math.tanh %308 : vector<8x32xf32>
    %310 = vector.extract_strided_slice %291 {offsets = [0, 96], sizes = [8, 32], strides = [1, 1]} : vector<8x128xf32> to vector<8x32xf32>
    %cst_120 = arith.constant 5.000000e-01 : f32
    %311 = vector.broadcast %cst_120 : f32 to vector<8x32xf32>
    %312 = arith.mulf %311, %310 : vector<8x32xf32>
    %313 = math.tanh %312 : vector<8x32xf32>
    %cst_121 = arith.constant 5.000000e-01 : f32
    %314 = vector.broadcast %cst_121 : f32 to vector<8x32xf32>
    %315 = arith.mulf %314, %313 : vector<8x32xf32>
    %cst_122 = arith.constant 5.000000e-01 : f32
    %316 = vector.broadcast %cst_122 : f32 to vector<8x32xf32>
    %317 = arith.addf %315, %316 : vector<8x32xf32>
    %318 = arith.mulf %307, %280 : vector<8x32xf32>
    %319 = arith.mulf %299, %309 : vector<8x32xf32>
    %320 = arith.addf %318, %319 : vector<8x32xf32>
    %321 = math.tanh %320 : vector<8x32xf32>
    %322 = arith.mulf %317, %321 : vector<8x32xf32>
    %c0_123 = arith.constant 0 : index
    %c7_124 = arith.constant 7 : index
    %c0_125 = arith.constant 0 : index
    %323 = vector.load %arg4[%c0_123, %c7_124, %c0_125] : memref<8x8x32xf32, #tpu.memory_space<vmem>>, vector<8x1x32xf32>
    %324 = vector.shape_cast %323 : vector<8x1x32xf32> to vector<8x32xf32>
    %325 = vector.shape_cast %322 : vector<8x32xf32> to vector<8x1x32xf32>
    tpu.vector_store %arg4[%c0_123, %c7_124, %c0_125], %325 {strides = array<i32>} : memref<8x8x32xf32, #tpu.memory_space<vmem>>, vector<8x1x32xf32>,
    %c0_126 = arith.constant 0 : index
    %c0_127 = arith.constant 0 : index
    %326 = vector.load %arg5[%c0_126, %c0_127] : memref<8x32xf32, #tpu.memory_space<vmem>>, vector<8x32xf32>
    tpu.vector_store %arg5[%c0_126, %c0_127], %322 {strides = array<i32>} : memref<8x32xf32, #tpu.memory_space<vmem>>, vector<8x32xf32>,
    %c0_128 = arith.constant 0 : index
    %c0_129 = arith.constant 0 : index
    %327 = vector.load %arg6[%c0_128, %c0_129] : memref<8x32xf32, #tpu.memory_space<vmem>>, vector<8x32xf32>
    tpu.vector_store %arg6[%c0_128, %c0_129], %320 {strides = array<i32>} : memref<8x32xf32, #tpu.memory_space<vmem>>, vector<8x32xf32>,
    return
  }
  func.func @transform_0(%arg0: i32, %arg1: i32) -> (i32, i32, i32) {
    %c0_i32 = arith.constant 0 : i32
    %c0_i32_0 = arith.constant 0 : i32
    return %arg1, %arg0, %c0_i32 : i32, i32, i32
  }
  func.func @transform_1(%arg0: i32, %arg1: i32) -> (i32, i32) {
    %c0_i32 = arith.constant 0 : i32
    %c0_i32_0 = arith.constant 0 : i32
    %c0_i32_1 = arith.constant 0 : i32
    return %c0_i32, %c0_i32_0 : i32, i32
  }
  func.func @transform_2(%arg0: i32, %arg1: i32) -> (i32, i32, i32) {
    %c0_i32 = arith.constant 0 : i32
    %c0_i32_0 = arith.constant 0 : i32
    return %arg0, %arg1, %c0_i32 : i32, i32, i32
  }
  func.func @transform_3(%arg0: i32, %arg1: i32) -> (i32, i32) {
    %c0_i32 = arith.constant 0 : i32
    %c0_i32_0 = arith.constant 0 : i32
    return %arg0, %c0_i32 : i32, i32
  }
  func.func @transform_4(%arg0: i32, %arg1: i32) -> (i32, i32) {
    %c0_i32 = arith.constant 0 : i32
    %c0_i32_0 = arith.constant 0 : i32
    return %arg0, %c0_i32 : i32, i32
  }
}

</mosaic_0001>

<bundles_post_ra>
// kernel: encoder_forward.1
= control target key start
LH: loop header
LB: loop body
LE: loop exit
PB: predicated region body
PF: predicated region fallthrough
CT: control target
= control target key end

     0   :  { %vm19_vm0 = vcmask 261120   ;;  %v892_v1 = vmov 0.0   ;;  %s893_s26 = smov 64   ;;  %s894_s29 = smov 32   ;;  %vm127_vm1 = vcmask 253952   ;;  %s1423_s1 = inlined_call_operand.vmem [shape: bf16[32,128], index: 1, kind: input, shape index: {}]   ;;  %s1424_s3 = inlined_call_operand.vmem [shape: f32[8,32], index: 3, kind: output, shape index: {1}]   ;;  %s1425_s4 = inlined_call_operand.vmem [shape: f32[8,32], index: 4, kind: output, shape index: {2}]   ;;  %s1426_s0 = inlined_call_operand.vmem [shape: bf16[8,8,128], index: 0, kind: input, shape index: {}]   ;;  %s1427_s2 = inlined_call_operand.vmem [shape: f32[8,8,32], index: 2, kind: output, shape index: {0}]  }
   0x1   :  { %v839_v0 = vld [vmem:[%s1423_s1 + $0x8] sm:$0xff]  ;;  %20 = vst.msk [vmem:[%s1424_s3] sm:$0xff] %vm19_vm0, %v892_v1  ;;  %v838_v2 = vld [vmem:[%s1423_s1] sm:$0xff]  ;;  %s895_s21 = smov 96  }
   0x2   :  { %53 = vmatpush.bf16.msra.mxu0 %v839_v0  ;;  %152 = vmatpush.bf16.msra.mxu1 %v839_v0  ;;  %21 = vst.msk [vmem:[%s1425_s4] sm:$0xff] %vm19_vm0, %v892_v1  ;;  %v28_v5 = vld [vmem:[%s1426_s0] sm:$0xf]  ;;  %v824_v27 = vld [vmem:[%s1426_s0 + $0x4] sm:$0xff]  }
   0x3   :  { %246 = vmatpush.bf16.msra.mxu2 %v839_v0  ;;  %340 = vmatpush.bf16.msra.mxu3 %v839_v0  ;;  %v29_v6 = vunpack.c.l.bf16 %v28_v5  ;;  %v138_v28 = vunpack.c.l.bf16 %v824_v27  ;;  %v232_v47 = vunpack.c.h.bf16 %v824_v27 }
   0x6   :  { %54 = vmatpush.bf16.msra.mxu0 %v838_v2  ;;  %153 = vmatpush.bf16.msra.mxu1 %v838_v2 }
   0x7   :  { %247 = vmatpush.bf16.msra.mxu2 %v838_v2  ;;  %341 = vmatpush.bf16.msra.mxu3 %v838_v2 }
   0x8   :  { %v22_v3 = vld [vmem:[%s1424_s3] sm:$0xff] }
   0x9   :  { %v30_v4 = vpack.c.bf16 %v22_v3, %v22_v3  ;;  %v23_v11 = vld [vmem:[%s1425_s4] sm:$0xff] }
   0xa   :  { %434 = vmatpush.bf16.msrb.mxu0 %v839_v0  ;;  %528 = vmatpush.bf16.msrb.mxu1 %v839_v0 }
   0xb   :  { %622 = vmatpush.bf16.msrb.mxu2 %v839_v0  ;;  %716 = vmatpush.bf16.msrb.mxu3 %v839_v0 }
   0xc   :  { %823 = vmatmul.msk.bf16.vlgmr.msra.gmra.mxu0 %vm19_vm0, %v30_v4 }
   0xe   :  { %435 = vmatpush.bf16.msrb.mxu0 %v838_v2  ;;  %529 = vmatpush.bf16.msrb.mxu1 %v838_v2 }
   0xf   :  { %623 = vmatpush.bf16.msrb.mxu2 %v838_v2  ;;  %717 = vmatpush.bf16.msrb.mxu3 %v838_v2  ;;  %v828_v2 = vld [vmem:[%s1426_s0 + $0xc] sm:$0xff]  }
  0x10   :  { %v326_v3 = vunpack.c.l.bf16 %v828_v2 }
  0x89   :  { %v56_v7 = vpop.f32.mrf.mxu0 }
  0x8a   :  { %v60_v8 = vadd.f32 %v56_v7, %v29_v6 }
  0x8c   :  { %844 = vtanh.f32 %v60_v8  ;;  %v61_v12 = vmul.f32 0.5, %v60_v8 }
  0x8e   :  { %846 = vtanh.f32 %v61_v12 }
  0x91   :  { %v58_v9 = vpop.f32.mrf.mxu0 }
  0x92   :  { %v845_v10 = vpop.eup %844 }
  0x93   :  { %72 = vrot.lane.b32.xlu0 %v845_v10, %s893_s26 }
  0x94   :  { %v847_v13 = vpop.eup %846 }
  0x95   :  { %v63_v14 = vmul.f32 0.5, %v847_v13 }
  0x97   :  { %v64_v15 = vadd.f32 0.5, %v63_v14 }
  0x9b   :  { %67 = vrot.lane.b32.xlu0 %v23_v11, %s894_s29 }
 0x105   :  { %v73_v16 = vpop.permute.xlu0 %72 }
 0x106   :  { %v75_v17 = vmul.f32 %v73_v16, %v64_v15 }
 0x108   :  { %77 = vrot.lane.b32.xlu1 %v75_v17, %s894_s29 }
 0x10d   :  { %v68_v18 = vpop.permute.xlu0 %67 }
 0x10e   :  { %v70_v19 = vmul.f32 %v68_v18, %v64_v15 }
 0x17a   :  { %v78_v20 = vpop.permute.xlu1 %77 }
 0x17b   :  { %v80_v21 = vadd.f32 %v78_v20, %v70_v19 }
 0x17d   :  { %848 = vtanh.f32 %v80_v21 }
 0x183   :  { %v849_v22 = vpop.eup %848 }
 0x184   :  { %83 = vrot.lane.b32.xlu1 %v849_v22, %s893_s26  ;;  %v420_v22 = vunpack.c.h.bf16 %v828_v2 }
 0x1f6   :  { %v84_v23 = vpop.permute.xlu1 %83 }
 0x1f7   :  { %v949_v24 = vmul.f32 %v84_v23, %v64_v15 }
 0x1f9   :  { %v139_v25 = vpack.c.bf16 %v949_v24, %v949_v24 }
 0x1fb   :  { %141 = vrot.lane.b32.xlu2 %v139_v25, %s894_s29 }
 0x255   :  { %v142_v26 = vpop.permute.xlu2 %141 }
 0x256   :  { %825 = vmatmul.msk.bf16.vlgmr.msra.gmra.mxu1 %vm19_vm0, %v142_v26 }
 0x2d3   :  { %v155_v29 = vpop.f32.mrf.mxu1 }
 0x2d4   :  { %v159_v30 = vadd.f32 %v155_v29, %v138_v28 }
 0x2d6   :  { %850 = vtanh.f32 %v159_v30  ;;  %v160_v33 = vmul.f32 0.5, %v159_v30 }
 0x2d8   :  { %852 = vtanh.f32 %v160_v33 }
 0x2db   :  { %v157_v31 = vpop.f32.mrf.mxu1 }
 0x2dc   :  { %v851_v32 = vpop.eup %850 }
 0x2dd   :  { %167 = vrot.lane.b32.xlu2 %v851_v32, %s893_s26 }
 0x2de   :  { %v853_v34 = vpop.eup %852 }
 0x2df   :  { %v162_v35 = vmul.f32 0.5, %v853_v34 }
 0x2e1   :  { %v163_v36 = vadd.f32 0.5, %v162_v35 }
 0x2e3   :  { %v165_v39 = vmul.f32 %v163_v36, %v80_v21 }
 0x337   :  { %v168_v37 = vpop.permute.xlu2 %167 }
 0x338   :  { %v170_v38 = vmul.f32 %v168_v37, %v163_v36 }
 0x33a   :  { %172 = vrot.lane.b32.xlu0 %v170_v38, %s894_s29 }
 0x3ac   :  { %v173_v40 = vpop.permute.xlu0 %172 }
 0x3ad   :  { %v175_v41 = vadd.f32 %v173_v40, %v165_v39 }
 0x3af   :  { %854 = vtanh.f32 %v175_v41 }
 0x3b5   :  { %v855_v42 = vpop.eup %854 }
 0x3b6   :  { %178 = vrot.lane.b32.xlu1 %v855_v42, %s893_s26  ;;  %v832_v42 = vld [vmem:[%s1426_s0 + $0x14] sm:$0xff]  }
 0x428   :  { %v179_v43 = vpop.permute.xlu1 %178 }
 0x429   :  { %v961_v44 = vmul.f32 %v179_v43, %v163_v36  ;;  %v514_v43 = vunpack.c.l.bf16 %v832_v42 }
 0x42b   :  { %v233_v45 = vpack.c.bf16 %v961_v44, %v961_v44 }
 0x42d   :  { %235 = vrot.lane.b32.xlu2 %v233_v45, %s894_s29 }
 0x487   :  { %v236_v46 = vpop.permute.xlu2 %235 }
 0x488   :  { %827 = vmatmul.msk.bf16.vlgmr.msra.gmra.mxu2 %vm19_vm0, %v236_v46 }
 0x50b   :  { %v249_v48 = vpop.f32.mrf.mxu2 }
 0x50c   :  { %v253_v49 = vadd.f32 %v249_v48, %v232_v47 }
 0x50e   :  { %856 = vtanh.f32 %v253_v49  ;;  %v254_v52 = vmul.f32 0.5, %v253_v49 }
 0x510   :  { %858 = vtanh.f32 %v254_v52 }
 0x513   :  { %v251_v50 = vpop.f32.mrf.mxu2 }
 0x514   :  { %v857_v51 = vpop.eup %856 }
 0x515   :  { %261 = vrot.lane.b32.xlu0 %v857_v51, %s893_s26 }
 0x516   :  { %v859_v53 = vpop.eup %858 }
 0x517   :  { %v256_v54 = vmul.f32 0.5, %v859_v53 }
 0x519   :  { %v257_v55 = vadd.f32 0.5, %v256_v54 }
 0x51b   :  { %v259_v58 = vmul.f32 %v257_v55, %v175_v41 }
 0x587   :  { %v262_v56 = vpop.permute.xlu0 %261 }
 0x588   :  { %v264_v57 = vmul.f32 %v262_v56, %v257_v55 }
 0x58a   :  { %266 = vrot.lane.b32.xlu1 %v264_v57, %s894_s29 }
 0x5fc   :  { %v267_v59 = vpop.permute.xlu1 %266 }
 0x5fd   :  { %v269_v60 = vadd.f32 %v267_v59, %v259_v58 }
 0x5ff   :  { %860 = vtanh.f32 %v269_v60 }
 0x605   :  { %v861_v61 = vpop.eup %860 }
 0x606   :  { %272 = vrot.lane.b32.xlu2 %v861_v61, %s893_s26 }
 0x660   :  { %v273_v62 = vpop.permute.xlu2 %272 }
 0x661   :  { %v970_v63 = vmul.f32 %v273_v62, %v257_v55 }
 0x663   :  { %v327_v0 = vpack.c.bf16 %v970_v63, %v970_v63 }
 0x665   :  { %329 = vrot.lane.b32.xlu0 %v327_v0, %s894_s29  ;;  %v608_v0 = vunpack.c.h.bf16 %v832_v42  ;;  %v189_v42 = vrot.slane %v961_v44, 7 }
 0x6d7   :  { %v330_v1 = vpop.permute.xlu0 %329 }
 0x6d8   :  { %829 = vmatmul.msk.bf16.vlgmr.msra.gmra.mxu3 %vm19_vm0, %v330_v1 }
 0x75b   :  { %v343_v4 = vpop.f32.mrf.mxu3 }
 0x75c   :  { %v347_v5 = vadd.f32 %v343_v4, %v326_v3 }
 0x75e   :  { %862 = vtanh.f32 %v347_v5  ;;  %v348_v8 = vmul.f32 0.5, %v347_v5 }
 0x760   :  { %864 = vtanh.f32 %v348_v8 }
 0x763   :  { %v345_v6 = vpop.f32.mrf.mxu3 }
 0x764   :  { %v863_v7 = vpop.eup %862 }
 0x765   :  { %355 = vrot.lane.b32.xlu1 %v863_v7, %s893_s26 }
 0x766   :  { %v865_v9 = vpop.eup %864 }
 0x767   :  { %v350_v10 = vmul.f32 0.5, %v865_v9 }
 0x769   :  { %v351_v11 = vadd.f32 0.5, %v350_v10 }
 0x76b   :  { %v353_v14 = vmul.f32 %v351_v11, %v269_v60 }
 0x7d7   :  { %v356_v12 = vpop.permute.xlu1 %355 }
 0x7d8   :  { %v358_v13 = vmul.f32 %v356_v12, %v351_v11  ;;  %v90_v12 = vrot.slane %v949_v24, 3 }
 0x7da   :  { %360 = vrot.lane.b32.xlu2 %v358_v13, %s894_s29  ;;  %v98_v13 = vperm.slane %v90_v12, 0 }
 0x834   :  { %v361_v15 = vpop.permute.xlu2 %360 }
 0x835   :  { %v363_v16 = vadd.f32 %v361_v15, %v353_v14  ;;  %v93_v14 = vrot.slane %v949_v24, 6 }
 0x837   :  { %866 = vtanh.f32 %v363_v16  ;;  %v101_v15 = vperm.slane %v93_v14, 0 }
 0x83d   :  { %v867_v17 = vpop.eup %866 }
 0x83e   :  { %366 = vrot.lane.b32.xlu0 %v867_v17, %s893_s26 }
 0x8b0   :  { %v367_v18 = vpop.permute.xlu0 %366 }
 0x8b1   :  { %v982_v19 = vmul.f32 %v367_v18, %v351_v11  ;;  %v95_v11 = vperm.slane %v949_v24, 0  ;;  %v188_v18 = vrot.slane %v961_v44, 6 }
 0x8b3   :  { %v421_v20 = vpack.c.bf16 %v982_v19, %v982_v19 }
 0x8b5   :  { %423 = vrot.lane.b32.xlu1 %v421_v20, %s894_s29  ;;  %v196_v20 = vperm.slane %v188_v18, 0 }
 0x927   :  { %v424_v21 = vpop.permute.xlu1 %423 }
 0x928   :  { %831 = vmatmul.msk.bf16.vlgmr.msrb.gmra.mxu0 %vm19_vm0, %v424_v21 }
 0x9a5   :  { %v437_v23 = vpop.f32.mrf.mxu0 }
 0x9a6   :  { %v441_v25 = vadd.f32 %v437_v23, %v420_v22 }
 0x9a8   :  { %868 = vtanh.f32 %v441_v25  ;;  %v442_v28 = vmul.f32 0.5, %v441_v25 }
 0x9aa   :  { %870 = vtanh.f32 %v442_v28 }
 0x9ad   :  { %v439_v26 = vpop.f32.mrf.mxu0 }
 0x9ae   :  { %v869_v27 = vpop.eup %868 }
 0x9af   :  { %449 = vrot.lane.b32.xlu2 %v869_v27, %s893_s26  ;;  %v88_v27 = vrot.slane %v949_v24, 1 }
 0x9b0   :  { %v871_v29 = vpop.eup %870 }
 0x9b1   :  { %v444_v30 = vmul.f32 0.5, %v871_v29  ;;  %v96_v29 = vperm.slane %v88_v27, 0 }
 0x9b3   :  { %v445_v31 = vadd.f32 0.5, %v444_v30  ;;  %v91_v30 = vrot.slane %v949_v24, 4 }
 0x9b5   :  { %v447_v34 = vmul.f32 %v445_v31, %v363_v16  ;;  %v183_v16 = vrot.slane %v961_v44, 1 }
 0x9b7   :  { %v191_v17 = vperm.slane %v183_v16, 0  ;;  %v373_v16 = vrot.slane %v982_v19, 3 }
 0x9b9   :  { %v381_v18 = vperm.slane %v373_v16, 0 }
 0xa09   :  { %v450_v32 = vpop.permute.xlu2 %449 }
 0xa0a   :  { %v452_v33 = vmul.f32 %v450_v32, %v445_v31  ;;  %v99_v32 = vperm.slane %v91_v30, 0 }
 0xa0c   :  { %454 = vrot.lane.b32.xlu0 %v452_v33, %s894_s29  ;;  %v94_v33 = vrot.slane %v949_v24, 7 }
 0xa7e   :  { %v455_v35 = vpop.permute.xlu0 %454 }
 0xa7f   :  { %v457_v36 = vadd.f32 %v455_v35, %v447_v34  ;;  %v102_v35 = vperm.slane %v94_v33, 0 }
 0xa81   :  { %872 = vtanh.f32 %v457_v36 }
 0xa87   :  { %v873_v37 = vpop.eup %872 }
 0xa88   :  { %460 = vrot.lane.b32.xlu1 %v873_v37, %s893_s26 }
 0xafa   :  { %v461_v38 = vpop.permute.xlu1 %460 }
 0xafb   :  { %v991_v39 = vmul.f32 %v461_v38, %v445_v31 }
 0xafd   :  { %v515_v40 = vpack.c.bf16 %v991_v39, %v991_v39 }
 0xaff   :  { %517 = vrot.lane.b32.xlu2 %v515_v40, %s894_s29  ;;  %v186_v40 = vrot.slane %v961_v44, 4 }
 0xb59   :  { %v518_v41 = vpop.permute.xlu2 %517 }
 0xb5a   :  { %833 = vmatmul.msk.bf16.vlgmr.msrb.gmra.mxu1 %vm19_vm0, %v518_v41  ;;  %v194_v41 = vperm.slane %v186_v40, 0 }
 0xbd7   :  { %v531_v45 = vpop.f32.mrf.mxu1 }
 0xbd8   :  { %v535_v46 = vadd.f32 %v531_v45, %v514_v43  ;;  %v197_v43 = vperm.slane %v189_v42, 0  ;;  %v278_v45 = vrot.slane %v970_v63, 2 }
 0xbda   :  { %874 = vtanh.f32 %v535_v46  ;;  %v536_v49 = vmul.f32 0.5, %v535_v46  ;;  %v286_v46 = vperm.slane %v278_v45, 0 }
 0xbdc   :  { %876 = vtanh.f32 %v536_v49  ;;  %v372_v49 = vrot.slane %v982_v19, 2 }
 0xbdf   :  { %v533_v47 = vpop.f32.mrf.mxu1 }
 0xbe0   :  { %v875_v48 = vpop.eup %874  ;;  %v281_v47 = vrot.slane %v970_v63, 5 }
 0xbe1   :  { %543 = vrot.lane.b32.xlu0 %v875_v48, %s893_s26 }
 0xbe2   :  { %v877_v50 = vpop.eup %876  ;;  %v289_v48 = vperm.slane %v281_v47, 0 }
 0xbe3   :  { %v538_v51 = vmul.f32 0.5, %v877_v50  ;;  %v380_v50 = vperm.slane %v372_v49, 0 }
 0xbe5   :  { %v539_v52 = vadd.f32 0.5, %v538_v51  ;;  %v375_v51 = vrot.slane %v982_v19, 5 }
 0xbe7   :  { %v541_v55 = vmul.f32 %v539_v52, %v457_v36  ;;  %v184_v36 = vrot.slane %v961_v44, 2 }
 0xbe9   :  { %v192_v38 = vperm.slane %v184_v36, 0 }
 0xc53   :  { %v544_v53 = vpop.permute.xlu0 %543 }
 0xc54   :  { %v546_v54 = vmul.f32 %v544_v53, %v539_v52 }
 0xc56   :  { %548 = vrot.lane.b32.xlu1 %v546_v54, %s894_s29 }
 0xcc8   :  { %v549_v56 = vpop.permute.xlu1 %548 }
 0xcc9   :  { %v551_v57 = vadd.f32 %v549_v56, %v541_v55  ;;  %v89_v56 = vrot.slane %v949_v24, 2 }
 0xccb   :  { %878 = vtanh.f32 %v551_v57 }
 0xcd1   :  { %v879_v58 = vpop.eup %878 }
 0xcd2   :  { %554 = vrot.lane.b32.xlu2 %v879_v58, %s893_s26  ;;  %v97_v58 = vperm.slane %v89_v56, 0 }
 0xd2c   :  { %v555_v59 = vpop.permute.xlu2 %554 }
 0xd2d   :  { %v1003_v60 = vmul.f32 %v555_v59, %v539_v52  ;;  %v383_v52 = vperm.slane %v375_v51, 0  ;;  %v92_v59 = vrot.slane %v949_v24, 5  ;;  %v185_v24 = vrot.slane %v961_v44, 3 }
 0xd2f   :  { %v609_v61 = vpack.c.bf16 %v1003_v60, %v1003_v60  ;;  %v563_v16 = vrot.slane %v1003_v60, 5 }
 0xd31   :  { %611 = vrot.lane.b32.xlu0 %v609_v61, %s894_s29 }
 0xda3   :  { %v612_v62 = vpop.permute.xlu0 %611 }
 0xda4   :  { %835 = vmatmul.msk.bf16.vlgmr.msrb.gmra.mxu2 %vm19_vm0, %v612_v62  ;;  %v100_v62 = vperm.slane %v92_v59, 0 }
 0xe27   :  { %v625_v1 = vpop.f32.mrf.mxu2 }
 0xe28   :  { %v629_v2 = vadd.f32 %v625_v1, %v608_v0  ;;  %v190_v1 = vperm.slane %v961_v44, 0 }
 0xe2a   :  { %880 = vtanh.f32 %v629_v2  ;;  %v630_v5 = vmul.f32 0.5, %v629_v2 }
 0xe2c   :  { %882 = vtanh.f32 %v630_v5 }
 0xe2f   :  { %v627_v3 = vpop.f32.mrf.mxu2 }
 0xe30   :  { %v881_v4 = vpop.eup %880  ;;  %v193_v3 = vperm.slane %v185_v24, 0  ;;  %v283_v24 = vrot.slane %v970_v63, 7 }
 0xe31   :  { %637 = vrot.lane.b32.xlu1 %v881_v4, %s893_s26  ;;  %v187_v4 = vrot.slane %v961_v44, 5  ;;  %v279_v44 = vrot.slane %v970_v63, 3 }
 0xe32   :  { %v883_v6 = vpop.eup %882 }
 0xe33   :  { %v632_v7 = vmul.f32 0.5, %v883_v6  ;;  %v195_v6 = vperm.slane %v187_v4, 0 }
 0xe35   :  { %v1010_v8 = vadd.f32 0.5, %v632_v7 }
 0xe37   :  { %v635_v21 = vmul.f32 %v1010_v8, %v551_v57 }
 0xea3   :  { %v638_v9 = vpop.permute.xlu1 %637 }
 0xea4   :  { %v640_v10 = vmul.f32 %v638_v9, %v1010_v8 }
 0xea6   :  { %642 = vrot.lane.b32.xlu2 %v640_v10, %s894_s29  ;;  %v287_v10 = vperm.slane %v279_v44, 0 }
 0xeae   :  { %103 = vrot.lane.b32.xlu2 %v95_v11, %s894_s29  ;;  %v282_v11 = vrot.slane %v970_v63, 6 }
 0xeb6   :  { %109 = vrot.lane.b32.xlu2 %v98_v13, %s894_s29  ;;  %v290_v13 = vperm.slane %v282_v11, 0  ;;  %v471_v11 = vrot.slane %v991_v39, 7 }
 0xebe   :  { %115 = vrot.lane.b32.xlu2 %v101_v15, %s894_s29  ;;  %v378_v15 = vperm.slane %v982_v19, 0 }
 0xec6   :  { %200 = vrot.lane.b32.xlu2 %v191_v17, %s894_s29 }
 0xece   :  { %210 = vrot.lane.b32.xlu2 %v196_v20, %s894_s29  ;;  %v376_v20 = vrot.slane %v982_v19, 6 }
 0xf00   :  { %v643_v22 = vpop.permute.xlu2 %642 }
 0xf01   :  { %v1025_v23 = vadd.f32 %v643_v22, %v635_v21  ;;  %v384_v21 = vperm.slane %v376_v20, 0  ;;  %v465_v22 = vrot.slane %v991_v39, 1 }
 0xf03   :  { %884 = vtanh.f32 %v1025_v23 }
 0xf08   :  { %v104_v25 = vpop.permute.xlu2 %103 }
 0xf09   :  { %v885_v26 = vpop.eup %884  ;;  %128 = vst.msk [vmem:[%s1427_s2] sm:$0x1] %vm127_vm1, %v104_v25  ;;  %v473_v25 = vperm.slane %v465_v22, 0 }
 0xf0a   :  { %648 = vrot.lane.b32.xlu0 %v885_v26, %s893_s26  ;;  %v468_v26 = vrot.slane %v991_v39, 4 }
 0xf0c   :  { %v476_v27 = vperm.slane %v468_v26, 0 }
 0xf10   :  { %v110_v28 = vpop.permute.xlu2 %109 }
 0xf11   :  { %131 = vst.msk [vmem:[%s1427_s2 + $0x18] sm:$0x1] %vm127_vm1, %v110_v28  ;;  %v559_v28 = vrot.slane %v1003_v60, 1 }
 0xf12   :  { %105 = vrot.lane.b32.xlu0 %v96_v29, %s894_s29 }
 0xf13   :  { %v567_v29 = vperm.slane %v559_v28, 0  ;;  %v472_v28 = vperm.slane %v991_v39, 0 }
 0xf18   :  { %v116_v31 = vpop.permute.xlu2 %115 }
 0xf19   :  { %134 = vst.msk [vmem:[%s1427_s2 + $0x30] sm:$0x1] %vm127_vm1, %v116_v31  ;;  %v562_v31 = vrot.slane %v1003_v60, 4 }
 0xf1a   :  { %111 = vrot.lane.b32.xlu0 %v99_v32, %s894_s29 }
 0xf1b   :  { %v570_v32 = vperm.slane %v562_v31, 0 }
 0xf20   :  { %v201_v34 = vpop.permute.xlu2 %200 }
 0xf21   :  { %223 = vst.msk [vmem:[%s1427_s2 + $0x9] sm:$0x1] %vm127_vm1, %v201_v34  ;;  %v565_v34 = vrot.slane %v1003_v60, 7 }
 0xf22   :  { %117 = vrot.lane.b32.xlu0 %v102_v35, %s894_s29 }
 0xf23   :  { %v573_v35 = vperm.slane %v565_v34, 0 }
 0xf28   :  { %v211_v37 = vpop.permute.xlu2 %210 }
 0xf29   :  { %228 = vst.msk [vmem:[%s1427_s2 + $0x31] sm:$0x1] %vm127_vm1, %v211_v37 }
 0xf2a   :  { %202 = vrot.lane.b32.xlu0 %v192_v38, %s894_s29 }
 0xf32   :  { %206 = vrot.lane.b32.xlu0 %v194_v41, %s894_s29 }
 0xf3a   :  { %212 = vrot.lane.b32.xlu0 %v197_v43, %s894_s29 }
 0xf42   :  { %296 = vrot.lane.b32.xlu0 %v286_v46, %s894_s29 }
 0xf4a   :  { %302 = vrot.lane.b32.xlu0 %v289_v48, %s894_s29 }
 0xf52   :  { %390 = vrot.lane.b32.xlu0 %v380_v50, %s894_s29 }
 0xf5a   :  { %396 = vrot.lane.b32.xlu0 %v383_v52, %s894_s29  ;;  %v836_v52 = vld [vmem:[%s1426_s0 + $0x1c] sm:$0xf] }
 0xf7c   :  { %v649_v53 = vpop.permute.xlu0 %648 }
 0xf7d   :  { %v1070_v54 = vmul.f32 %v649_v53, %v1010_v8  ;;  %v284_v8 = vperm.slane %v970_v63, 0 }
 0xf7f   :  { %v703_v55 = vpack.c.bf16 %v1070_v54, %v1070_v54 }
 0xf81   :  { %705 = vrot.lane.b32.xlu1 %v703_v55, %s894_s29  ;;  %v702_v55 = vunpack.c.l.bf16 %v836_v52  ;;  %v659_v52 = vrot.slane %v1070_v54, 7 }
 0xf84   :  { %v106_v57 = vpop.permute.xlu0 %105 }
 0xf85   :  { %129 = vst.msk [vmem:[%s1427_s2 + $0x8] sm:$0x1] %vm127_vm1, %v106_v57 }
 0xf89   :  { %107 = vrot.lane.b32.xlu1 %v97_v58, %s894_s29 }
 0xf8c   :  { %v112_v61 = vpop.permute.xlu0 %111 }
 0xf8d   :  { %132 = vst.msk [vmem:[%s1427_s2 + $0x20] sm:$0x1] %vm127_vm1, %v112_v61  ;;  %v277_v61 = vrot.slane %v970_v63, 1 }
 0xf91   :  { %113 = vrot.lane.b32.xlu1 %v100_v62, %s894_s29  ;;  %v285_v62 = vperm.slane %v277_v61, 0 }
 0xf94   :  { %v118_v0 = vpop.permute.xlu0 %117 }
 0xf95   :  { %135 = vst.msk [vmem:[%s1427_s2 + $0x38] sm:$0x1] %vm127_vm1, %v118_v0  ;;  %v280_v0 = vrot.slane %v970_v63, 4  ;;  %v466_v63 = vrot.slane %v991_v39, 2 }
 0xf97   :  { %v474_v44 = vperm.slane %v466_v63, 0 }
 0xf99   :  { %198 = vrot.lane.b32.xlu1 %v190_v1, %s894_s29  ;;  %v288_v1 = vperm.slane %v280_v0, 0 }
 0xf9c   :  { %v203_v2 = vpop.permute.xlu0 %202 }
 0xf9d   :  { %224 = vst.msk [vmem:[%s1427_s2 + $0x11] sm:$0x1] %vm127_vm1, %v203_v2  ;;  %v291_v2 = vperm.slane %v283_v24, 0 }
 0xfa1   :  { %204 = vrot.lane.b32.xlu1 %v193_v3, %s894_s29  ;;  %v371_v3 = vrot.slane %v982_v19, 1 }
 0xfa3   :  { %v379_v4 = vperm.slane %v371_v3, 0  ;;  %v654_v3 = vrot.slane %v1070_v54, 2 }
 0xfa4   :  { %v207_v5 = vpop.permute.xlu0 %206 }
 0xfa5   :  { %226 = vst.msk [vmem:[%s1427_s2 + $0x21] sm:$0x1] %vm127_vm1, %v207_v5  ;;  %v374_v5 = vrot.slane %v982_v19, 4 }
 0xfa9   :  { %208 = vrot.lane.b32.xlu1 %v195_v6, %s894_s29  ;;  %v382_v6 = vperm.slane %v374_v5, 0  ;;  %v662_v5 = vperm.slane %v654_v3, 0 }
 0xfac   :  { %v213_v7 = vpop.permute.xlu0 %212 }
 0xfad   :  { %229 = vst.msk [vmem:[%s1427_s2 + $0x39] sm:$0x1] %vm127_vm1, %v213_v7  ;;  %v377_v7 = vrot.slane %v982_v19, 7  ;;  %v560_v19 = vrot.slane %v1003_v60, 2 }
 0xfb1   :  { %292 = vrot.lane.b32.xlu1 %v284_v8, %s894_s29  ;;  %v385_v8 = vperm.slane %v377_v7, 0 }
 0xfb4   :  { %v297_v9 = vpop.permute.xlu0 %296 }
 0xfb5   :  { %318 = vst.msk [vmem:[%s1427_s2 + $0x12] sm:$0x1] %vm127_vm1, %v297_v9  ;;  %v469_v9 = vrot.slane %v991_v39, 5 }
 0xfb9   :  { %298 = vrot.lane.b32.xlu1 %v287_v10, %s894_s29  ;;  %v477_v10 = vperm.slane %v469_v9, 0 }
 0xfbc   :  { %v303_v12 = vpop.permute.xlu0 %302 }
 0xfbd   :  { %321 = vst.msk [vmem:[%s1427_s2 + $0x2a] sm:$0x1] %vm127_vm1, %v303_v12  ;;  %v479_v12 = vperm.slane %v471_v11, 0 }
 0xfc1   :  { %304 = vrot.lane.b32.xlu1 %v290_v13, %s894_s29 }
 0xfc4   :  { %v391_v14 = vpop.permute.xlu0 %390 }
 0xfc5   :  { %412 = vst.msk [vmem:[%s1427_s2 + $0x13] sm:$0x1] %vm127_vm1, %v391_v14  ;;  %v568_v14 = vperm.slane %v560_v19, 0 }
 0xfc9   :  { %386 = vrot.lane.b32.xlu1 %v378_v15, %s894_s29 }
 0xfcc   :  { %v397_v17 = vpop.permute.xlu0 %396 }
 0xfcd   :  { %415 = vst.msk [vmem:[%s1427_s2 + $0x2b] sm:$0x1] %vm127_vm1, %v397_v17 }
 0xfd1   :  { %392 = vrot.lane.b32.xlu1 %v381_v18, %s894_s29  ;;  %v571_v18 = vperm.slane %v563_v16, 0 }
 0xfd9   :  { %398 = vrot.lane.b32.xlu1 %v384_v21, %s894_s29 }
 0xfe1   :  { %482 = vrot.lane.b32.xlu1 %v473_v25, %s894_s29  ;;  %v660_v25 = vperm.slane %v1070_v54, 0 }
 0xfe9   :  { %488 = vrot.lane.b32.xlu1 %v476_v27, %s894_s29  ;;  %v655_v27 = vrot.slane %v1070_v54, 3 }
 0xff1   :  { %576 = vrot.lane.b32.xlu1 %v567_v29, %s894_s29  ;;  %v663_v29 = vperm.slane %v655_v27, 0 }
 0xff3   :  { %v706_v30 = vpop.permute.xlu1 %705 }
 0xff4   :  { %837 = vmatmul.msk.bf16.vlgmr.msrb.gmra.mxu3 %vm19_vm0, %v706_v30  ;;  %v467_v30 = vrot.slane %v991_v39, 3 }
 0xff9   :  { %582 = vrot.lane.b32.xlu1 %v570_v32, %s894_s29  ;;  %v658_v32 = vrot.slane %v1070_v54, 6 }
 0xffb   :  { %v108_v33 = vpop.permute.xlu1 %107  ;;  %v666_v34 = vperm.slane %v658_v32, 0 }
 0xffc   :  { %130 = vst.msk [vmem:[%s1427_s2 + $0x10] sm:$0x1] %vm127_vm1, %v108_v33  ;;  %v475_v33 = vperm.slane %v467_v30, 0 }
0x1001   :  { %588 = vrot.lane.b32.xlu1 %v573_v35, %s894_s29  ;;  %v470_v35 = vrot.slane %v991_v39, 6  ;;  %v561_v39 = vrot.slane %v1003_v60, 3 }
0x1003   :  { %v114_v36 = vpop.permute.xlu1 %113 }
0x1004   :  { %133 = vst.msk [vmem:[%s1427_s2 + $0x28] sm:$0x1] %vm127_vm1, %v114_v36 }
0x100b   :  { %v199_v37 = vpop.permute.xlu1 %198 }
0x100c   :  { %222 = vst.msk [vmem:[%s1427_s2 + $0x1] sm:$0x1] %vm127_vm1, %v199_v37  ;;  %v478_v37 = vperm.slane %v470_v35, 0 }
0x1013   :  { %v205_v38 = vpop.permute.xlu1 %204 }
0x1014   :  { %225 = vst.msk [vmem:[%s1427_s2 + $0x19] sm:$0x1] %vm127_vm1, %v205_v38 }
0x101b   :  { %v209_v40 = vpop.permute.xlu1 %208 }
0x101c   :  { %227 = vst.msk [vmem:[%s1427_s2 + $0x29] sm:$0x1] %vm127_vm1, %v209_v40  ;;  %v566_v40 = vperm.slane %v1003_v60, 0 }
0x1023   :  { %v293_v41 = vpop.permute.xlu1 %292 }
0x1024   :  { %316 = vst.msk [vmem:[%s1427_s2 + $0x2] sm:$0x1] %vm127_vm1, %v293_v41 }
0x102b   :  { %v299_v42 = vpop.permute.xlu1 %298 }
0x102c   :  { %319 = vst.msk [vmem:[%s1427_s2 + $0x1a] sm:$0x1] %vm127_vm1, %v299_v42  ;;  %v569_v42 = vperm.slane %v561_v39, 0 }
0x1033   :  { %v305_v43 = vpop.permute.xlu1 %304 }
0x1034   :  { %322 = vst.msk [vmem:[%s1427_s2 + $0x32] sm:$0x1] %vm127_vm1, %v305_v43  ;;  %v564_v43 = vrot.slane %v1003_v60, 6  ;;  %v656_v60 = vrot.slane %v1070_v54, 4 }
0x103b   :  { %v387_v45 = vpop.permute.xlu1 %386 }
0x103c   :  { %410 = vst.msk [vmem:[%s1427_s2 + $0x3] sm:$0x1] %vm127_vm1, %v387_v45 }
0x1043   :  { %v393_v46 = vpop.permute.xlu1 %392 }
0x1044   :  { %413 = vst.msk [vmem:[%s1427_s2 + $0x1b] sm:$0x1] %vm127_vm1, %v393_v46  ;;  %v572_v46 = vperm.slane %v564_v43, 0 }
0x104b   :  { %v399_v47 = vpop.permute.xlu1 %398 }
0x104c   :  { %416 = vst.msk [vmem:[%s1427_s2 + $0x33] sm:$0x1] %vm127_vm1, %v399_v47  ;;  %v653_v47 = vrot.slane %v1070_v54, 1 }
0x1053   :  { %v483_v48 = vpop.permute.xlu1 %482 }
0x1054   :  { %505 = vst.msk [vmem:[%s1427_s2 + $0xc] sm:$0x1] %vm127_vm1, %v483_v48 }
0x105b   :  { %v489_v49 = vpop.permute.xlu1 %488 }
0x105c   :  { %508 = vst.msk [vmem:[%s1427_s2 + $0x24] sm:$0x1] %vm127_vm1, %v489_v49  ;;  %v661_v49 = vperm.slane %v653_v47, 0 }
0x1063   :  { %v577_v50 = vpop.permute.xlu1 %576 }
0x1064   :  { %599 = vst.msk [vmem:[%s1427_s2 + $0xd] sm:$0x1] %vm127_vm1, %v577_v50 }
0x106b   :  { %v583_v51 = vpop.permute.xlu1 %582 }
0x106c   :  { %602 = vst.msk [vmem:[%s1427_s2 + $0x25] sm:$0x1] %vm127_vm1, %v583_v51  ;;  %v664_v51 = vperm.slane %v656_v60, 0 }
0x1073   :  { %v589_v53 = vpop.permute.xlu1 %588 }
0x1074   :  { %605 = vst.msk [vmem:[%s1427_s2 + $0x3d] sm:$0x1] %vm127_vm1, %v589_v53 }
0x1077   :  { %v719_v56 = vpop.f32.mrf.mxu3 }
0x1078   :  { %v723_v57 = vadd.f32 %v719_v56, %v702_v55  ;;  %v667_v55 = vperm.slane %v659_v52, 0 }
0x107a   :  { %886 = vtanh.f32 %v723_v57  ;;  %v724_v13 = vmul.f32 0.5, %v723_v57 }
0x107c   :  { %888 = vtanh.f32 %v724_v13 }
0x107f   :  { %v721_v58 = vpop.f32.mrf.mxu3 }
0x1080   :  { %v887_v59 = vpop.eup %886 }
0x1081   :  { %731 = vrot.lane.b32.xlu2 %v887_v59, %s893_s26 }
0x1082   :  { %v889_v15 = vpop.eup %888 }
0x1083   :  { %v726_v17 = vmul.f32 0.5, %v889_v15 }
0x1085   :  { %v1238_v20 = vadd.f32 0.5, %v726_v17 }
0x1089   :  { %294 = vrot.lane.b32.xlu2 %v285_v62, %s894_s29  ;;  %v729_v62 = vmul.f32 %v1238_v20, %v1025_v23  ;;  %v657_v23 = vrot.slane %v1070_v54, 5 }
0x108b   :  { %v665_v7 = vperm.slane %v657_v23, 0 }
0x1091   :  { %300 = vrot.lane.b32.xlu2 %v288_v1, %s894_s29 }
0x1099   :  { %306 = vrot.lane.b32.xlu2 %v291_v2, %s894_s29 }
0x10a1   :  { %388 = vrot.lane.b32.xlu2 %v379_v4, %s894_s29 }
0x10a9   :  { %394 = vrot.lane.b32.xlu2 %v382_v6, %s894_s29 }
0x10b1   :  { %400 = vrot.lane.b32.xlu2 %v385_v8, %s894_s29 }
0x10b9   :  { %484 = vrot.lane.b32.xlu2 %v474_v44, %s894_s29 }
0x10c1   :  { %490 = vrot.lane.b32.xlu2 %v477_v10, %s894_s29 }
0x10c9   :  { %494 = vrot.lane.b32.xlu2 %v479_v12, %s894_s29 }
0x10d1   :  { %578 = vrot.lane.b32.xlu2 %v568_v14, %s894_s29 }
0x10d9   :  { %584 = vrot.lane.b32.xlu2 %v571_v18, %s894_s29 }
0x10db   :  { %v732_v21 = vpop.permute.xlu2 %731 }
0x10dc   :  { %v734_v22 = vmul.f32 %v732_v21, %v1238_v20 }
0x10de   :  { %736 = vrot.lane.b32.xlu0 %v734_v22, %s894_s29 }
0x10e1   :  { %668 = vrot.lane.b32.xlu2 %v660_v25, %s894_s29 }
0x10e3   :  { %v295_v26 = vpop.permute.xlu2 %294 }
0x10e4   :  { %317 = vst.msk [vmem:[%s1427_s2 + $0xa] sm:$0x1] %vm127_vm1, %v295_v26 }
0x10e6   :  { %480 = vrot.lane.b32.xlu0 %v472_v28, %s894_s29 }
0x10e9   :  { %674 = vrot.lane.b32.xlu2 %v663_v29, %s894_s29 }
0x10eb   :  { %v301_v31 = vpop.permute.xlu2 %300 }
0x10ec   :  { %320 = vst.msk [vmem:[%s1427_s2 + $0x22] sm:$0x1] %vm127_vm1, %v301_v31 }
0x10ee   :  { %486 = vrot.lane.b32.xlu0 %v475_v33, %s894_s29 }
0x10f1   :  { %680 = vrot.lane.b32.xlu2 %v666_v34, %s894_s29 }
0x10f3   :  { %v307_v36 = vpop.permute.xlu2 %306 }
0x10f4   :  { %323 = vst.msk [vmem:[%s1427_s2 + $0x3a] sm:$0x1] %vm127_vm1, %v307_v36 }
0x10f6   :  { %492 = vrot.lane.b32.xlu0 %v478_v37, %s894_s29 }
0x10fb   :  { %v389_v38 = vpop.permute.xlu2 %388 }
0x10fc   :  { %411 = vst.msk [vmem:[%s1427_s2 + $0xb] sm:$0x1] %vm127_vm1, %v389_v38 }
0x10fe   :  { %574 = vrot.lane.b32.xlu0 %v566_v40, %s894_s29 }
0x1103   :  { %v395_v41 = vpop.permute.xlu2 %394 }
0x1104   :  { %414 = vst.msk [vmem:[%s1427_s2 + $0x23] sm:$0x1] %vm127_vm1, %v395_v41 }
0x1106   :  { %580 = vrot.lane.b32.xlu0 %v569_v42, %s894_s29 }
0x110b   :  { %v401_v45 = vpop.permute.xlu2 %400 }
0x110c   :  { %417 = vst.msk [vmem:[%s1427_s2 + $0x3b] sm:$0x1] %vm127_vm1, %v401_v45 }
0x110e   :  { %586 = vrot.lane.b32.xlu0 %v572_v46, %s894_s29 }
0x1113   :  { %v485_v48 = vpop.permute.xlu2 %484 }
0x1114   :  { %506 = vst.msk [vmem:[%s1427_s2 + $0x14] sm:$0x1] %vm127_vm1, %v485_v48 }
0x1116   :  { %670 = vrot.lane.b32.xlu0 %v661_v49, %s894_s29 }
0x111b   :  { %v491_v50 = vpop.permute.xlu2 %490 }
0x111c   :  { %509 = vst.msk [vmem:[%s1427_s2 + $0x2c] sm:$0x1] %vm127_vm1, %v491_v50 }
0x111e   :  { %676 = vrot.lane.b32.xlu0 %v664_v51, %s894_s29 }
0x1123   :  { %v495_v53 = vpop.permute.xlu2 %494 }
0x1124   :  { %511 = vst.msk [vmem:[%s1427_s2 + $0x3c] sm:$0x1] %vm127_vm1, %v495_v53 }
0x1126   :  { %682 = vrot.lane.b32.xlu0 %v667_v55, %s894_s29 }
0x112b   :  { %v579_v56 = vpop.permute.xlu2 %578 }
0x112c   :  { %600 = vst.msk [vmem:[%s1427_s2 + $0x15] sm:$0x1] %vm127_vm1, %v579_v56 }
0x1133   :  { %v585_v57 = vpop.permute.xlu2 %584 }
0x1134   :  { %603 = vst.msk [vmem:[%s1427_s2 + $0x2d] sm:$0x1] %vm127_vm1, %v585_v57 }
0x113b   :  { %v669_v58 = vpop.permute.xlu2 %668 }
0x113c   :  { %692 = vst.msk [vmem:[%s1427_s2 + $0x6] sm:$0x1] %vm127_vm1, %v669_v58 }
0x1143   :  { %v675_v59 = vpop.permute.xlu2 %674 }
0x1144   :  { %695 = vst.msk [vmem:[%s1427_s2 + $0x1e] sm:$0x1] %vm127_vm1, %v675_v59 }
0x114b   :  { %v681_v61 = vpop.permute.xlu2 %680 }
0x114c   :  { %698 = vst.msk [vmem:[%s1427_s2 + $0x36] sm:$0x1] %vm127_vm1, %v681_v61 }
0x1150   :  { %v737_v0 = vpop.permute.xlu0 %736 }
0x1151   :  { %v739_v1 = vadd.f32 %v737_v0, %v729_v62 }
0x1153   :  { %890 = vtanh.f32 %v739_v1 }
0x1158   :  { %v481_v24 = vpop.permute.xlu0 %480 }
0x1159   :  { %v891_v2 = vpop.eup %890  ;;  %504 = vst.msk [vmem:[%s1427_s2 + $0x4] sm:$0x1] %vm127_vm1, %v481_v24 }
0x115a   :  { %742 = vrot.lane.b32.xlu1 %v891_v2, %s893_s26 }
0x1160   :  { %v487_v4 = vpop.permute.xlu0 %486 }
0x1161   :  { %507 = vst.msk [vmem:[%s1427_s2 + $0x1c] sm:$0x1] %vm127_vm1, %v487_v4 }
0x1162   :  { %672 = vrot.lane.b32.xlu1 %v662_v5, %s894_s29 }
0x1168   :  { %v493_v6 = vpop.permute.xlu0 %492 }
0x1169   :  { %510 = vst.msk [vmem:[%s1427_s2 + $0x34] sm:$0x1] %vm127_vm1, %v493_v6 }
0x116a   :  { %678 = vrot.lane.b32.xlu1 %v665_v7, %s894_s29 }
0x1170   :  { %v575_v8 = vpop.permute.xlu0 %574 }
0x1171   :  { %598 = vst.msk [vmem:[%s1427_s2 + $0x5] sm:$0x1] %vm127_vm1, %v575_v8 }
0x1178   :  { %v581_v63 = vpop.permute.xlu0 %580 }
0x1179   :  { %601 = vst.msk [vmem:[%s1427_s2 + $0x1d] sm:$0x1] %vm127_vm1, %v581_v63 }
0x1180   :  { %v587_v54 = vpop.permute.xlu0 %586 }
0x1181   :  { %604 = vst.msk [vmem:[%s1427_s2 + $0x35] sm:$0x1] %vm127_vm1, %v587_v54 }
0x1188   :  { %v671_v44 = vpop.permute.xlu0 %670 }
0x1189   :  { %693 = vst.msk [vmem:[%s1427_s2 + $0xe] sm:$0x1] %vm127_vm1, %v671_v44 }
0x1190   :  { %v677_v9 = vpop.permute.xlu0 %676 }
0x1191   :  { %696 = vst.msk [vmem:[%s1427_s2 + $0x26] sm:$0x1] %vm127_vm1, %v677_v9 }
0x1198   :  { %v683_v10 = vpop.permute.xlu0 %682 }
0x1199   :  { %699 = vst.msk [vmem:[%s1427_s2 + $0x3e] sm:$0x1] %vm127_vm1, %v683_v10 }
0x11cc   :  { %v743_v11 = vpop.permute.xlu1 %742 }
0x11cd   :  { %v745_v12 = vmul.f32 %v743_v11, %v1238_v20 }
0x11cf   :  { %v754_v13 = vperm.slane %v745_v12, 0  ;;  %v748_v19 = vrot.slane %v745_v12, 2  ;;  %v747_v14 = vrot.slane %v745_v12, 1  ;;  %v749_v17 = vrot.slane %v745_v12, 3 }
0x11d0   :  { %v751_v21 = vrot.slane %v745_v12, 5  ;;  %v750_v20 = vrot.slane %v745_v12, 4  ;;  %v752_v27 = vrot.slane %v745_v12, 6  ;;  %v753_v29 = vrot.slane %v745_v12, 7 }
0x11d1   :  { %762 = vrot.lane.b32.xlu1 %v754_v13, %s894_s29  ;;  %v756_v15 = vperm.slane %v748_v19, 0  ;;  %v755_v16 = vperm.slane %v747_v14, 0  ;;  %v757_v22 = vperm.slane %v749_v17, 0 }
0x11d2   :  { %v759_v25 = vperm.slane %v751_v21, 0  ;;  %v758_v26 = vperm.slane %v750_v20, 0  ;;  %v760_v30 = vperm.slane %v752_v27, 0  ;;  %v761_v31 = vperm.slane %v753_v29, 0 }
0x11d3   :  { %766 = vrot.lane.b32.xlu0 %v756_v15, %s894_s29  ;;  %764 = vrot.lane.b32.xlu2 %v755_v16, %s894_s29 }
0x11d4   :  { %v673_v18 = vpop.permute.xlu1 %672 }
0x11d5   :  { %694 = vst.msk [vmem:[%s1427_s2 + $0x16] sm:$0x1] %vm127_vm1, %v673_v18 }
0x11d9   :  { %768 = vrot.lane.b32.xlu1 %v757_v22, %s894_s29 }
0x11db   :  { %772 = vrot.lane.b32.xlu0 %v759_v25, %s894_s29  ;;  %770 = vrot.lane.b32.xlu2 %v758_v26, %s894_s29 }
0x11dc   :  { %v679_v28 = vpop.permute.xlu1 %678 }
0x11dd   :  { %697 = vst.msk [vmem:[%s1427_s2 + $0x2e] sm:$0x1] %vm127_vm1, %v679_v28 }
0x11e1   :  { %774 = vrot.lane.b32.xlu1 %v760_v30, %s894_s29 }
0x11e3   :  { %794 = vrot.lane.b32.xlu0 %v745_v12, %s894_s29  ;;  %776 = vrot.lane.b32.xlu2 %v761_v31, %s894_s29 }
0x11e9   :  { %799 = vrot.lane.b32.xlu1 %v739_v1, %s895_s21 }
0x122d   :  { %v765_v32 = vpop.permute.xlu2 %764 }
0x122e   :  { %787 = vst.msk [vmem:[%s1427_s2 + $0xf] sm:$0x1] %vm127_vm1, %v765_v32 }
0x1235   :  { %v771_v33 = vpop.permute.xlu2 %770 }
0x1236   :  { %790 = vst.msk [vmem:[%s1427_s2 + $0x27] sm:$0x1] %vm127_vm1, %v771_v33 }
0x123d   :  { %v777_v34 = vpop.permute.xlu2 %776 }
0x123e   :  { %793 = vst.msk [vmem:[%s1427_s2 + $0x3f] sm:$0x1] %vm127_vm1, %v777_v34 }
0x1243   :  { %v763_v35 = vpop.permute.xlu1 %762 }
0x1244   :  { %786 = vst.msk [vmem:[%s1427_s2 + $0x7] sm:$0x1] %vm127_vm1, %v763_v35 }
0x1245   :  { %v767_v36 = vpop.permute.xlu0 %766 }
0x1246   :  { %788 = vst.msk [vmem:[%s1427_s2 + $0x17] sm:$0x1] %vm127_vm1, %v767_v36 }
0x124b   :  { %v769_v37 = vpop.permute.xlu1 %768 }
0x124c   :  { %789 = vst.msk [vmem:[%s1427_s2 + $0x1f] sm:$0x1] %vm127_vm1, %v769_v37 }
0x124d   :  { %v773_v38 = vpop.permute.xlu0 %772 }
0x124e   :  { %791 = vst.msk [vmem:[%s1427_s2 + $0x2f] sm:$0x1] %vm127_vm1, %v773_v38 }
0x1253   :  { %v775_v40 = vpop.permute.xlu1 %774 }
0x1254   :  { %792 = vst.msk [vmem:[%s1427_s2 + $0x37] sm:$0x1] %vm127_vm1, %v775_v40 }
0x1255   :  { %v795_v39 = vpop.permute.xlu0 %794 }
0x1256   :  { %797 = vst.msk [vmem:[%s1424_s3] sm:$0xff] %vm19_vm0, %v795_v39 }
0x125b   :  { %v800_v41 = vpop.permute.xlu1 %799 }
0x125c   :  { %802 = vst.msk [vmem:[%s1425_s4] sm:$0xff] %vm19_vm0, %v800_v41 }

</bundles_post_ra>
